<compile_context>
chip_gen: v7x
topology: tpu7x:2x2x1
jax: 0.10.0
libtpu: 0.0.40
codegen_flags: <defaults>
</compile_context>

<pallas_src>
import jax
import jax.numpy as jnp
from jax.experimental import pallas as pl
from jax.experimental.pallas import tpu as pltpu


def _round_up(a, b):
    return -(-a // b) * b


def _tensorcores_per_chip():
    """Best-effort TC-per-chip detection (2 on v7x, 1 on v5e/v6e)."""
    try:
        kind = jax.devices()[0].device_kind.lower()
        if "v7" in kind or "7x" in kind:
            return 2
    except Exception:
        pass
    return 1


def _gpe_kernel(x_ref, wt_ref, o_ref):
    # enc = [x | 1] @ [W^T ; phase-row]  — K = F+1 is tiny, MXU slot has huge slack.
    enc = jnp.dot(x_ref[...], wt_ref[...], preferred_element_type=jnp.float32)
    # One transcendental per output lane: sin lanes get sin(enc); cos lanes had +pi/2
    # folded into the matmul so sin(enc + pi/2) == cos(enc).  Pad lanes (zero weight,
    # zero phase) produce sin(0) == 0.0.
    o_ref[...] = jnp.sin(enc).astype(o_ref.dtype)


def init_gaussian_encoding_weight(key, sigma=25.0, in_features=3,
                                  encoding_dimension=93, use_only_sin=True,
                                  dtype=jnp.float32):
    """Deterministic stand-in for nn.init.normal_(weight, 0, sigma)."""
    if not use_only_sin:
        encoding_dimension = encoding_dimension // 2
    w = jax.random.normal(key, (encoding_dimension, in_features), dtype) * sigma
    return w  # (E, F), same convention as nn.Linear.weight


def gaussian_positional_encoding(x, weight, use_only_sin=True, *, block_n=4096,
                                 out_dtype=None, pad_lanes=False):
    """Pallas forward pass of GaussianPositionalEncoding.

    x:         (..., F) float array
    weight:    (E, F)   nn.Linear-style weight (no bias)
    out_dtype: optional output dtype (e.g. jnp.bfloat16 to halve writeback; explicit
               opt-in — sin/cos outputs in [-1,1] lose ~3 significant digits in bf16)
    pad_lanes: if True, pad the feature axis to a multiple of 128 for fully unmasked
               lane-dense stores; padded lanes are exactly 0.0 and the padded width is
               returned (no trim pass).
    """
    orig_shape = x.shape
    F = orig_shape[-1]
    E, Fw = weight.shape
    assert F == Fw, "feature dim mismatch"
    out_dtype = x.dtype if out_dtype is None else out_dtype

    x2 = x.reshape(-1, F).astype(jnp.float32)
    N = x2.shape[0]

    # Append a ones column so the cos-phase (+pi/2) can ride inside the matmul.
    x_aug = jnp.concatenate([x2, jnp.ones((N, 1), jnp.float32)], axis=1)
    K = F + 1

    feat = E if use_only_sin else 2 * E
    out_w = _round_up(feat, 128) if pad_lanes else feat

    w_t = weight.T.astype(jnp.float32)                    # (F, E)
    wt = jnp.zeros((K, out_w), jnp.float32)
    if use_only_sin:
        wt = wt.at[:F, :E].set(w_t)                       # phase row stays 0 -> sin
    else:
        wt = wt.at[:F, :E].set(w_t)                       # cos half: columns [0:E)
        wt = wt.at[:F, E:2 * E].set(w_t)                  # sin half: columns [E:2E)
        wt = wt.at[F, :E].set(jnp.pi / 2)                 # +pi/2 phase -> cos

    # Block size: multiple of 8, clamped to the problem.  Only force >= 2 balanced
    # blocks on multi-TensorCore parts (v7x) so both TCs get work.
    block_n = max(8, min(_round_up(block_n, 8), _round_up(N, 8)))
    if _tensorcores_per_chip() >= 2 and N >= 16 and pl.cdiv(N, block_n) < 2:
        block_n = max(8, _round_up(pl.cdiv(N, 2), 8))
    grid_n = pl.cdiv(N, block_n)

    out = pl.pallas_call(
        _gpe_kernel,
        out_shape=jax.ShapeDtypeStruct((N, out_w), out_dtype),
        grid_spec=pltpu.PrefetchScalarGridSpec(
            num_scalar_prefetch=0,
            grid=(grid_n,),
            in_specs=[
                pl.BlockSpec((block_n, K), lambda i: (i, 0)),   # x row tile
                pl.BlockSpec((K, out_w), lambda i: (0, 0)),     # tiny resident W^T+phase
            ],
            out_specs=pl.BlockSpec((block_n, out_w), lambda i: (i, 0)),
        ),
        compiler_params=pltpu.CompilerParams(
            dimension_semantics=("parallel",),
            vmem_limit_bytes=32 * 1024 * 1024,    # keep double-buffering on v5e (16 MiB default)
        ),
    )(x_aug, wt)

    # No trim pass: kernel already wrote the exact (or intentionally padded) width.
    return out.reshape(*orig_shape[:-1], out_w)


def _reference(x, weight, use_only_sin=True):
    enc = jnp.einsum("...f,ef->...e", x, weight)
    if use_only_sin:
        return jnp.sin(enc)
    return jnp.concatenate([jnp.cos(enc), jnp.sin(enc)], axis=-1)


if __name__ == "__main__":
    key = jax.random.PRNGKey(0)
    k_w, k_ws, k_x = jax.random.split(key, 3)

    sigma = 25.0
    in_features = 3
    encoding_dimension = 93

    # Small, module-consistent input: 128 3-D points.
    x = jax.random.uniform(k_x, (128, in_features), jnp.float32)

    # Default path: use_only_sin=True  -> output (128, 93)
    w_sin = init_gaussian_encoding_weight(
        k_w, sigma, in_features, encoding_dimension, use_only_sin=True)
    out_sin = gaussian_positional_encoding(x, w_sin, use_only_sin=True)
    jax.block_until_ready(out_sin)
    assert out_sin.shape == (128, encoding_dimension)
    ref_sin = _reference(x, w_sin, use_only_sin=True)
    assert jnp.allclose(out_sin, ref_sin, atol=2e-4, rtol=2e-4)

    # cos+sin path: encoding_dimension halved -> output (128, 2*(93//2)) = (128, 92)
    w_cs = init_gaussian_encoding_weight(
        k_ws, sigma, in_features, encoding_dimension, use_only_sin=False)
    out_cs = gaussian_positional_encoding(x, w_cs, use_only_sin=False)
    jax.block_until_ready(out_cs)
    assert out_cs.shape == (128, 2 * (encoding_dimension // 2))
    ref_cs = _reference(x, w_cs, use_only_sin=False)
    assert jnp.allclose(out_cs, ref_cs, atol=2e-4, rtol=2e-4)

    # Lane-padded variant: first 93 lanes match, pad lanes are exactly 0.0.
    out_pad = gaussian_positional_encoding(x, w_sin, use_only_sin=True, pad_lanes=True)
    jax.block_until_ready(out_pad)
    assert out_pad.shape == (128, 128)
    assert jnp.allclose(out_pad[:, :encoding_dimension], ref_sin, atol=2e-4, rtol=2e-4)
    assert jnp.allclose(out_pad[:, encoding_dimension:], 0.0)

    print("KERNEL_OK")
</pallas_src>

<mosaic_0001>
module attributes {stable_mosaic.version = 11 : i64} {
  func.func @_gpe_kernel(%arg0: i32, %arg1: memref<128x4xf32, #tpu.memory_space<vmem>>, %arg2: memref<4x93xf32, #tpu.memory_space<vmem>>, %arg3: memref<128x93xf32, #tpu.memory_space<vmem>>) attributes {dimension_semantics = [#tpu.dimension_semantics<parallel>], iteration_bounds = array<i64: 1>, scalar_prefetch = 0 : i64, scratch_operands = 0 : i64, tpu.core_type = #tpu.core_type<tc>, window_params = [{transform_indices = @transform_0, window_bounds = array<i64: 128, 4>}, {pipeline_mode = #tpu.pipeline_mode<synchronous>, transform_indices = @transform_1, window_bounds = array<i64: 4, 93>}, {transform_indices = @transform_2, window_bounds = array<i64: 128, 93>}]} {
    %c0 = arith.constant 0 : index
    %c0_0 = arith.constant 0 : index
    %0 = vector.load %arg1[%c0, %c0_0] : memref<128x4xf32, #tpu.memory_space<vmem>>, vector<128x4xf32>
    %c0_1 = arith.constant 0 : index
    %c0_2 = arith.constant 0 : index
    %1 = vector.load %arg2[%c0_1, %c0_2] : memref<4x93xf32, #tpu.memory_space<vmem>>, vector<4x93xf32>
    %cst = arith.constant dense<0.000000e+00> : vector<128x93xf32>
    %2 = tpu.matmul %0, %1, %cst {dimension_numbers = #tpu.dot_dimension_numbers<[1], [0], [0], [1], [0, 0, 1, 1], [], []>} : vector<128x4xf32>, vector<4x93xf32>, vector<128x93xf32> -> vector<128x93xf32>
    %3 = math.sin %2 : vector<128x93xf32>
    %c0_3 = arith.constant 0 : index
    %c0_4 = arith.constant 0 : index
    %4 = vector.load %arg3[%c0_3, %c0_4] : memref<128x93xf32, #tpu.memory_space<vmem>>, vector<128x93xf32>
    tpu.vector_store %arg3[%c0_3, %c0_4], %3 {strides = array<i32>} : memref<128x93xf32, #tpu.memory_space<vmem>>, vector<128x93xf32>,
    return
  }
  func.func @transform_0(%arg0: i32) -> (i32, i32) {
    %c0_i32 = arith.constant 0 : i32
    %c0_i32_0 = arith.constant 0 : i32
    return %arg0, %c0_i32 : i32, i32
  }
  func.func @transform_1(%arg0: i32) -> (i32, i32) {
    %c0_i32 = arith.constant 0 : i32
    %c0_i32_0 = arith.constant 0 : i32
    %c0_i32_1 = arith.constant 0 : i32
    return %c0_i32, %c0_i32_0 : i32, i32
  }
  func.func @transform_2(%arg0: i32) -> (i32, i32) {
    %c0_i32 = arith.constant 0 : i32
    %c0_i32_0 = arith.constant 0 : i32
    return %arg0, %c0_i32 : i32, i32
  }
}

</mosaic_0001>

<bundles_post_ra>
// kernel: tpu_custom_call.1
= control target key start
LH: loop header
LB: loop body
LE: loop exit
PB: predicated region body
PF: predicated region fallthrough
CT: control target
= control target key end

     0   :  { %vm77_vm0 = vcmask 1043456   ;;  %vm28_vm1 = vcmask 31744   ;;  %v2171_v53 = vmov 683565275   ;;  %v2172_v57 = vmov 2475754826   ;;  %s3525_s1 = inlined_call_operand.vmem [shape: f32[4,93], index: 1, kind: input, shape index: {}]   ;;  %s3526_s0 = inlined_call_operand.vmem [shape: f32[128,4], index: 0, kind: input, shape index: {}]   ;;  %s3527_s2 = inlined_call_operand.vmem [shape: f32[128,93], index: 2, kind: output, shape index: {}]  }
   0x1   :  { %v27_v0 = vld [vmem:[%s3525_s1] sm:$0xf]  ;;  %v12_v3 = vld [vmem:[%s3526_s0 + $0x8] sm:$0xff]  ;;  %v13_v5 = vld [vmem:[%s3526_s0 + $0x10] sm:$0xff]  ;;  %v2173_v59 = vmov 2131351028  }
   0x2   :  { %v11_v1 = vld [vmem:[%s3526_s0] sm:$0xff]  ;;  %2009 = vmatprep.subr.msk.mxu0 %vm77_vm0, %v27_v0  ;;  %2035 = vmatprep.subr.msk.mxu1 %vm77_vm0, %v27_v0  ;;  %v20_v4 = vld [vmem:[%s3526_s0 + $0x48] sm:$0xff]  ;;  %v21_v6 = vld [vmem:[%s3526_s0 + $0x50] sm:$0xff]  ;;  %v2174_v61 = vmov 2102212464  }
   0x3   :  { %v19_v2 = vld [vmem:[%s3526_s0 + $0x40] sm:$0xff]  ;;  %2010 = vmatpush3.msk.msra.mxu0 %vm77_vm0, %v27_v0  ;;  %2036 = vmatpush3.msk.msra.mxu1 %vm77_vm0, %v27_v0  ;;  %v14_v7 = vld [vmem:[%s3526_s0 + $0x18] sm:$0xff]  ;;  %v16_v11 = vld [vmem:[%s3526_s0 + $0x28] sm:$0xff]  ;;  %v2175_v63 = vmov 920167782  }
   0x4   :  { %2011 = vmatprep.mubr.msk.f32.mxu0 %vm28_vm1, %v11_v1  ;;  %2023 = vmatprep.mubr.msk.f32.mxu1 %vm28_vm1, %v19_v2  ;;  %v22_v8 = vld [vmem:[%s3526_s0 + $0x58] sm:$0xff]  ;;  %v15_v9 = vld [vmem:[%s3526_s0 + $0x20] sm:$0xff]  ;;  %v24_v12 = vld [vmem:[%s3526_s0 + $0x68] sm:$0xff] }
   0x5   :  { %2012 = vmatmul.mubr.msk.f32.vlgmr.msra.gmra.mrb[0].mxu0 %vm28_vm1, %v12_v3  ;;  %2024 = vmatmul.mubr.msk.f32.vlgmr.msra.gmra.mrb[0].mxu1 %vm28_vm1, %v20_v4  ;;  %v23_v10 = vld [vmem:[%s3526_s0 + $0x60] sm:$0xff]  ;;  %v17_v13 = vld [vmem:[%s3526_s0 + $0x30] sm:$0xff]  ;;  %v18_v15 = vld [vmem:[%s3526_s0 + $0x38] sm:$0xff] }
   0x6   :  { %2014 = vmatprep.mubr.msk.f32.mxu0 %vm28_vm1, %v13_v5  ;;  %2026 = vmatprep.mubr.msk.f32.mxu1 %vm28_vm1, %v21_v6  ;;  %v25_v14 = vld [vmem:[%s3526_s0 + $0x70] sm:$0xff]  ;;  %v26_v16 = vld [vmem:[%s3526_s0 + $0x78] sm:$0xff]  ;;  %v2176_v6 = vmov 1326507024  }
   0x9   :  { %2015 = vmatmul.mubr.msk.f32.gmra.mrb[2].mxu0 %vm28_vm1, %v14_v7  ;;  %2027 = vmatmul.mubr.msk.f32.gmra.mrb[2].mxu1 %vm28_vm1, %v22_v8 }
   0xa   :  { %2017 = vmatprep.mubr.msk.f32.mxu0 %vm28_vm1, %v15_v9  ;;  %2029 = vmatprep.mubr.msk.f32.mxu1 %vm28_vm1, %v23_v10 }
   0xd   :  { %2018 = vmatmul.mubr.msk.f32.gmra.mrb[4].mxu0 %vm28_vm1, %v16_v11  ;;  %2030 = vmatmul.mubr.msk.f32.gmra.mrb[4].mxu1 %vm28_vm1, %v24_v12 }
   0xe   :  { %2020 = vmatprep.mubr.msk.f32.mxu0 %vm28_vm1, %v17_v13  ;;  %2032 = vmatprep.mubr.msk.f32.mxu1 %vm28_vm1, %v25_v14 }
  0x11   :  { %2021 = vmatmul.mubr.msk.f32.gmra.mrb[6].mxu0 %vm28_vm1, %v18_v15  ;;  %2033 = vmatmul.mubr.msk.f32.gmra.mrb[6].mxu1 %vm28_vm1, %v26_v16 }
  0xd8   :  { %v2259_v17 = vpop.f32.mrb[0].mxu0  ;;  %v2261_v18 = vpop.f32.mrb[0].mxu1 }
  0xd9   :  { %v330_v19 = vand.u32 2147483647, %v2259_v17  ;;  %v333_v20 = vand.u32 2139095040, %v2259_v17  ;;  %v2265_v21 = vpop.f32.mrb[1].mxu0  ;;  %v2267_v22 = vpop.f32.mrb[1].mxu1  ;;  %v1165_v24 = vand.u32 2139095040, %v2261_v18 }
  0xda   :  { %v1162_v23 = vand.u32 2147483647, %v2261_v18  ;;  %v229_v29 = vand.u32 2139095040, %v2265_v21  ;;  %v226_v40 = vand.u32 2147483647, %v2265_v21  ;;  %v1061_v51 = vand.u32 2139095040, %v2267_v22 }
  0xdb   :  { %v334_v25 = vshrl.u32 %v333_v20, 23  ;;  %v337_v26 = vand.u32 8388607, %v330_v19  ;;  %v1166_v27 = vshrl.u32 %v1165_v24, 23  ;;  %vm332_vm15 = vcmp.lt.s32.totalorder %v2259_v17, 0 }
  0xdc   :  { %v1169_v28 = vand.u32 8388607, %v1162_v23  ;;  %v2276_v31 = vpop.f32.mrb[2].mxu0  ;;  %v2278_v32 = vpop.f32.mrb[2].mxu1  ;;  %v230_v34 = vshrl.u32 %v229_v29, 23 }
  0xdd   :  { %v1932_v30 = vadd.s32 4294967169, %v334_v25  ;;  %v1964_v33 = vadd.s32 4294967169, %v1166_v27  ;;  %v2280_v35 = vpop.f32.mrb[3].mxu0  ;;  %v338_v36 = vor.u32 8388608, %v337_v26  ;;  %v2283_v42 = vpop.f32.mrb[3].mxu1 }
  0xde   :  { %v1170_v38 = vor.u32 8388608, %v1169_v28  ;;  %v1928_v41 = vadd.s32 4294967169, %v230_v34  ;;  %v2291_v49 = vand.u32 8388607, %v226_v40  ;;  %vm2383_vm0 = vcmp.le.f32.partialorder %v330_v19, 0.7853982 }
  0xdf   :  { %v340_v37 = vadd.s32 1, %v1932_v30  ;;  %v1172_v39 = vadd.s32 1, %v1964_v33  ;;  %v2285_v46 = vshll.u32 %v338_v36, 8 }
  0xe0   :  { %v2287_v48 = vshll.u32 %v1170_v38, 8  ;;  %v2293_v50 = vadd.s32 1, %v1928_v41 }
  0xe1   :  { %vm341_vm2 = vcmp.gt.s32.totalorder %v340_v37, 0  ;;  %vm1173_vm3 = vcmp.gt.s32.totalorder %v1172_v39, 0 }
  0xe2   :  { %v342_v43 = vsel %vm341_vm2, %v340_v37, 0  ;;  %v1174_v47 = vsel %vm1173_vm3, %v1172_v39, 0  ;;  %vm237_vm8 = vcmp.gt.s32.totalorder %v2293_v50, 0 }
  0xe3   :  { %v343_v44 = vshrl.u32 %v342_v43, 5  ;;  %v344_v45 = vand.u32 31, %v342_v43  ;;  %v2297_v55 = vshrl.u32 %v1174_v47, 5  ;;  %v1176_v56 = vand.u32 31, %v1174_v47 }
  0xe5   :  { %v345_v52 = vsub.s32 32, %v344_v45  ;;  %v347_v54 = vshll.u32 %v2171_v53, %v344_v45  ;;  %v350_v58 = vshll.u32 %v2172_v57, %v344_v45  ;;  %v353_v60 = vshll.u32 %v2173_v59, %v344_v45 }
  0xe6   :  { %v356_v62 = vshll.u32 %v2174_v61, %v344_v45  ;;  %v359_v0 = vshll.u32 %v2175_v63, %v344_v45  ;;  %vm362_vm4 = vcmp.lt.s32.totalorder %v343_v44, 1  ;;  %vm363_vm5 = vcmp.lt.s32.totalorder %v343_v44, 2 }
  0xe7   :  { %v348_v1 = vshrl.u32 %v2172_v57, %v345_v52  ;;  %v351_v2 = vshrl.u32 %v2173_v59, %v345_v52  ;;  %v354_v3 = vshrl.u32 %v2174_v61, %v345_v52  ;;  %v346_v4 = vshrl.u32 %v2171_v53, %v345_v52 }
  0xe8   :  { %v357_v5 = vshrl.u32 %v2175_v63, %v345_v52  ;;  %v360_v7 = vshrl.u32 %v2176_v6, %v345_v52  ;;  %v1177_v11 = vsub.s32 32, %v1176_v56  ;;  %vm364_vm6 = vcmp.lt.s32.totalorder %v343_v44, 3 }
  0xe9   :  { %v349_v8 = vor.u32 %v348_v1, %v347_v54  ;;  %v352_v9 = vor.u32 %v351_v2, %v350_v58  ;;  %v355_v10 = vor.u32 %v354_v3, %v353_v60  ;;  %vm365_vm7 = vcmp.lt.s32.totalorder %v343_v44, 4 }
  0xea   :  { %v358_v12 = vor.u32 %v357_v5, %v356_v62  ;;  %v361_v13 = vor.u32 %v360_v7, %v359_v0  ;;  %v1179_v27 = vshll.u32 %v2171_v53, %v1176_v56  ;;  %v1180_v30 = vshrl.u32 %v2172_v57, %v1177_v11 }
  0xeb   :  { %v366_v14 = vsel %vm362_vm4, %v346_v4, %v349_v8  ;;  %v367_v15 = vsel %vm365_vm7, %v355_v10, 2102212464  ;;  %v370_v16 = vsel %vm362_vm4, %v349_v8, %v352_v9  ;;  %v374_v20 = vsel %vm362_vm4, %v352_v9, %v355_v10 }
  0xec   :  { %v368_v24 = vsel %vm364_vm6, %v352_v9, %v367_v15  ;;  %v371_v25 = vsel %vm365_vm7, %v358_v12, 920167782  ;;  %v375_v26 = vsel %vm365_vm7, %v361_v13, 1326507024  ;;  %v1182_v33 = vshll.u32 %v2172_v57, %v1176_v56 }
  0xed   :  { %v372_v28 = vsel %vm364_vm6, %v355_v10, %v371_v25  ;;  %v376_v29 = vsel %vm364_vm6, %v358_v12, %v375_v26  ;;  %v369_v34 = vsel %vm363_vm5, %v366_v14, %v368_v24  ;;  %v1183_v38 = vshrl.u32 %v2173_v59, %v1177_v11 }
  0xee   :  { %v373_v36 = vsel %vm363_vm5, %v370_v16, %v372_v28  ;;  %v377_v37 = vsel %vm363_vm5, %v374_v20, %v376_v29  ;;  %v1181_v47 = vor.u32 %v1180_v30, %v1179_v27  ;;  %v1185_v54 = vshll.u32 %v2173_v59, %v1176_v56 }
  0xef   :  { %v2321_v39 = vmul.u32.u64.low %v2285_v46, %v377_v37  ;;  %v2322_v41 = vmul.u32.u64.high %v2285_v46, %v377_v37, %v2321_v39  ;;  %v2325_v43 = vmul.u32.u64.low %v2285_v46, %v373_v36  ;;  %v2326_v45 = vmul.u32.u64.high %v2285_v46, %v373_v36, %v2325_v43 }
  0xf0   :  { %v1184_v52 = vor.u32 %v1183_v38, %v1182_v33  ;;  %v1186_v58 = vshrl.u32 %v2174_v61, %v1177_v11  ;;  %v1178_v60 = vshrl.u32 %v2171_v53, %v1177_v11  ;;  %v1188_v44 = vshll.u32 %v2174_v61, %v1176_v56  ;;  %v2363_v38 = vpop.f32.mrb[4].mxu0 }
  0xf1   :  { %v1189_v62 = vshrl.u32 %v2175_v63, %v1177_v11  ;;  %v1192_v0 = vshrl.u32 %v2176_v6, %v1177_v11  ;;  %v385_v1 = vmul.u32 %v2285_v46, %v369_v34  ;;  %v1191_v3 = vshll.u32 %v2175_v63, %v1176_v56 }
  0xf2   :  { %v1187_v2 = vor.u32 %v1186_v58, %v1185_v54  ;;  %vm1194_vm9 = vcmp.lt.s32.totalorder %v2297_v55, 1  ;;  %vm387_vm10 = vc.u32 %v2322_v41, %v2325_v43  ;;  %v388_v4 = vadd.s32 1, %v2326_v45 }
  0xf3   :  { %v1190_v5 = vor.u32 %v1189_v62, %v1188_v44  ;;  %vm1195_vm11 = vcmp.lt.s32.totalorder %v2297_v55, 2  ;;  %v1193_v7 = vor.u32 %v1192_v0, %v1191_v3  ;;  %vm1196_vm12 = vcmp.lt.s32.totalorder %v2297_v55, 3 }
  0xf4   :  { %vm1197_vm13 = vcmp.lt.s32.totalorder %v2297_v55, 4  ;;  %v1202_v8 = vsel %vm1194_vm9, %v1181_v47, %v1184_v52  ;;  %v389_v46 = vsel %vm387_vm10, %v388_v4, %v2326_v45  ;;  %v1206_v56 = vsel %vm1194_vm9, %v1184_v52, %v1187_v2 }
  0xf5   :  { %v1199_v9 = vsel %vm1197_vm13, %v1187_v2, 2102212464  ;;  %v1203_v10 = vsel %vm1197_vm13, %v1190_v5, 920167782  ;;  %v390_v11 = vadd.s32 %v389_v46, %v385_v1  ;;  %v1198_v12 = vsel %vm1194_vm9, %v1178_v60, %v1181_v47 }
  0xf6   :  { %v1204_v13 = vsel %vm1196_vm12, %v1187_v2, %v1203_v10  ;;  %v1207_v14 = vsel %vm1197_vm13, %v1193_v7, 1326507024  ;;  %v1200_v15 = vsel %vm1196_vm12, %v1184_v52, %v1199_v9  ;;  %v238_v24 = vsel %vm237_vm8, %v2293_v50, 0 }
  0xf7   :  { %v1205_v16 = vsel %vm1195_vm11, %v1202_v8, %v1204_v13  ;;  %v1208_v20 = vsel %vm1196_vm12, %v1190_v5, %v1207_v14  ;;  %v391_v25 = vadd.s32 536870912, %v390_v11  ;;  %v1058_v33 = vand.u32 2147483647, %v2267_v22 }
  0xf8   :  { %v1209_v26 = vsel %vm1195_vm11, %v1206_v56, %v1208_v20  ;;  %v2351_v27 = vmul.u32.u64.low %v2287_v48, %v1205_v16  ;;  %v2352_v28 = vmul.u32.u64.high %v2287_v48, %v1205_v16, %v2351_v27  ;;  %v1201_v36 = vsel %vm1195_vm11, %v1198_v12, %v1200_v15 }
  0xf9   :  { %v2356_v29 = vmul.u32.u64.low %v2287_v48, %v1209_v26  ;;  %v2357_v30 = vmul.u32.u64.high %v2287_v48, %v1209_v26, %v2356_v29  ;;  %v392_v34 = vshrl.u32 %v391_v25, 30  ;;  %v234_v50 = vor.u32 8388608, %v2291_v49 }
  0xfa   :  { %v240_v37 = vand.u32 31, %v238_v24  ;;  %v1220_v45 = vadd.s32 1, %v2352_v28  ;;  %v1062_v52 = vshrl.u32 %v1061_v51, 23  ;;  %v1217_v54 = vmul.u32 %v2287_v48, %v1201_v36 }
  0xfb   :  { %v393_v39 = vshll.u32 %v392_v34, 30  ;;  %vm1219_vm14 = vc.u32 %v2357_v30, %v2351_v27  ;;  %v2373_v55 = vand.u32 8388607, %v1058_v33  ;;  %v2379_v60 = vshll.u32 %v234_v50, 8 }
  0xfc   :  { %v241_v47 = vsub.s32 32, %v240_v37  ;;  %v1221_v58 = vsel %vm1219_vm14, %v1220_v45, %v2352_v28  ;;  %v386_v48 = vadd.s32 %v2325_v43, %v2322_v41  ;;  %v2388_v62 = vshrl.u32 %v238_v24, 5 }
  0xfd   :  { %v2376_v49 = vsub.s32 %v390_v11, %v393_v39  ;;  %v1222_v44 = vadd.s32 %v1221_v58, %v1217_v54  ;;  %v1960_v4 = vadd.s32 4294967169, %v1062_v52  ;;  %v416_v5 = vsub.s32 4, %v392_v34 }
  0xfe   :  { %v244_v0 = vshrl.u32 %v2172_v57, %v241_v47  ;;  %v247_v2 = vshrl.u32 %v2173_v59, %v241_v47  ;;  %v250_v3 = vshrl.u32 %v2174_v61, %v241_v47  ;;  %v243_v19 = vshll.u32 %v2171_v53, %v240_v37 }
  0xff   :  { %v396_v1 = vsub.s32 0, %v2376_v49  ;;  %v1223_v7 = vadd.s32 536870912, %v1222_v44  ;;  %v1066_v8 = vor.u32 8388608, %v2373_v55  ;;  %v246_v43 = vshll.u32 %v2172_v57, %v240_v37 }
 0x100   :  { %v249_v46 = vshll.u32 %v2173_v59, %v240_v37  ;;  %v253_v9 = vshrl.u32 %v2175_v63, %v241_v47  ;;  %v245_v56 = vor.u32 %v244_v0, %v243_v19  ;;  %v252_v11 = vshll.u32 %v2174_v61, %v240_v37 }
 0x101   :  { %v1933_v41 = vmin.u32 %v396_v1, %v2376_v49  ;;  %v1224_v10 = vshrl.u32 %v1223_v7, 30  ;;  %v256_v12 = vshrl.u32 %v2176_v6, %v241_v47  ;;  %v248_v14 = vor.u32 %v247_v2, %v246_v43 }
 0x102   :  { %v251_v15 = vor.u32 %v250_v3, %v249_v46  ;;  %v255_v16 = vshll.u32 %v2175_v63, %v240_v37  ;;  %v417_v20 = vsel %vm332_vm15, %v416_v5, %v392_v34  ;;  %v254_v25 = vor.u32 %v253_v9, %v252_v11 }
 0x103   :  { %v398_v13 = vclz %v1933_v41  ;;  %v1225_v24 = vshll.u32 %v1224_v10, 30  ;;  %vm258_vm1 = vcmp.lt.s32.totalorder %v2388_v62, 1  ;;  %vm259_vm2 = vcmp.lt.s32.totalorder %v2388_v62, 2 }
 0x104   :  { %v257_v28 = vor.u32 %v256_v12, %v255_v16  ;;  %vm261_vm3 = vcmp.lt.s32.totalorder %v2388_v62, 4  ;;  %vm1164_vm4 = vcmp.lt.s32.totalorder %v2261_v18, 0  ;;  %v242_v36 = vshrl.u32 %v2171_v53, %v241_v47 }
 0x105   :  { %v1934_v26 = vadd.s32 4294967294, %v398_v13  ;;  %v2409_v29 = vsub.s32 %v1222_v44, %v1225_v24  ;;  %vm260_vm5 = vcmp.lt.s32.totalorder %v2388_v62, 3  ;;  %v267_v34 = vsel %vm261_vm3, %v254_v25, 920167782 }
 0x106   :  { %v419_v50 = vsel %vm2383_vm0, 0, %v417_v20  ;;  %v266_v37 = vsel %vm258_vm1, %v245_v56, %v248_v14  ;;  %v268_v39 = vsel %vm260_vm5, %v251_v15, %v267_v34  ;;  %v1248_v54 = vsub.s32 4, %v1224_v10 }
 0x107   :  { %vm1935_vm6 = vcmp.lt.s32.totalorder %v1934_v26, 0  ;;  %v1228_v52 = vsub.s32 0, %v2409_v29  ;;  %v270_v47 = vsel %vm258_vm1, %v248_v14, %v251_v15  ;;  %vm2426_vm7 = vcmp.le.f32.partialorder %v1162_v23, 0.7853982 }
 0x108   :  { %v401_v45 = vsel %vm1935_vm6, 0, %v1934_v26  ;;  %v263_v1 = vsel %vm261_vm3, %v251_v15, 2102212464  ;;  %v271_v2 = vsel %vm261_vm3, %v257_v28, 1326507024  ;;  %v269_v7 = vsel %vm259_vm2, %v266_v37, %v268_v39  ;;  %v2459_v28 = vpop.f32.mrb[4].mxu1 }
 0x109   :  { %v402_v58 = vsub.s32 32, %v401_v45  ;;  %v406_v44 = vsub.s32 4294967266, %v401_v45  ;;  %v403_v3 = vshll.u32 %v2376_v49, %v401_v45  ;;  %v1965_v5 = vmin.u32 %v1228_v52, %v2409_v29 }
 0x10a   :  { %v272_v19 = vsel %vm260_vm5, %v254_v25, %v271_v2  ;;  %v1068_v46 = vadd.s32 1, %v1960_v4  ;;  %v423_v9 = vadd.s32 3, %v419_v50  ;;  %v262_v12 = vsel %vm258_vm1, %v242_v36, %v245_v56 }
 0x10b   :  { %v404_v23 = vshrl.u32 %v386_v48, %v402_v58  ;;  %v407_v41 = vadd.s32 127, %v406_v44  ;;  %v273_v43 = vsel %vm259_vm2, %v270_v47, %v272_v19  ;;  %v1230_v11 = vclz %v1965_v5 }
 0x10c   :  { %v264_v49 = vsel %vm260_vm5, %v248_v14, %v263_v1  ;;  %v2447_v16 = vmul.u32.u64.low %v2379_v60, %v273_v43  ;;  %v2448_v20 = vmul.u32.u64.high %v2379_v60, %v273_v43, %v2447_v16  ;;  %vm1069_vm8 = vcmp.gt.s32.totalorder %v1068_v46, 0 }
 0x10d   :  { %v405_v13 = vor.u32 %v404_v23, %v403_v3  ;;  %v408_v15 = vshll.u32 %v407_v41, 23  ;;  %v1966_v48 = vadd.s32 4294967294, %v1230_v11  ;;  %v1218_v56 = vadd.s32 %v2351_v27, %v2357_v30 }
 0x10e   :  { %v2451_v24 = vmul.u32.u64.low %v2379_v60, %v269_v7  ;;  %v2452_v25 = vmul.u32.u64.high %v2379_v60, %v269_v7, %v2451_v24  ;;  %v1249_v14 = vsel %vm1164_vm4, %v1248_v54, %v1224_v10  ;;  %v1070_v26 = vsel %vm1069_vm8, %v1068_v46, 0 }
 0x10f   :  { %v409_v4 = vor.u32 4788187, %v408_v15  ;;  %v2461_v36 = vand.u32 3, %v423_v9  ;;  %vm1967_vm9 = vcmp.lt.s32.totalorder %v1966_v48, 0  ;;  %v265_v34 = vsel %vm259_vm2, %v262_v12, %v264_v49 }
 0x110   :  { %v1072_v50 = vand.u32 31, %v1070_v26  ;;  %v412_v39 = vcvt.s32.f32 %v405_v13  ;;  %v1233_v45 = vsel %vm1967_vm9, 0, %v1966_v48  ;;  %vm283_vm10 = vc.u32 %v2448_v20, %v2451_v24 }
 0x111   :  { %v410_v37 = vand.u32 2147483647, %v409_v4  ;;  %v1234_v27 = vsub.s32 32, %v1233_v45  ;;  %v1238_v30 = vsub.s32 4294967266, %v1233_v45  ;;  %v1251_v10 = vsel %vm2426_vm7, 0, %v1249_v14 }
 0x112   :  { %v284_v52 = vadd.s32 1, %v2452_v25  ;;  %v281_v47 = vmul.u32 %v2379_v60, %v265_v34  ;;  %v2471_v58 = vshrl.u32 %v1070_v26, 5  ;;  %v1073_v62 = vsub.s32 32, %v1072_v50 }
 0x113   :  { %v413_v54 = vmul.f32 %v412_v39, %v410_v37  ;;  %v1235_v44 = vshll.u32 %v2409_v29, %v1233_v45  ;;  %v1236_v1 = vshrl.u32 %v1218_v56, %v1234_v27  ;;  %v1239_v2 = vadd.s32 127, %v1238_v30 }
 0x114   :  { %v285_v3 = vsel %vm283_vm10, %v284_v52, %v2452_v25  ;;  %v1075_v19 = vshll.u32 %v2171_v53, %v1072_v50  ;;  %v1076_v23 = vshrl.u32 %v2172_v57, %v1073_v62  ;;  %v1078_v46 = vshll.u32 %v2172_v57, %v1072_v50 }
 0x115   :  { %v414_v5 = vxor.u32 2147483648, %v413_v54  ;;  %v286_v7 = vadd.s32 %v285_v3, %v281_v47  ;;  %v1237_v41 = vor.u32 %v1236_v1, %v1235_v44  ;;  %v1240_v43 = vshll.u32 %v1239_v2, 23 }
 0x116   :  { %v1079_v60 = vshrl.u32 %v2173_v59, %v1073_v62  ;;  %v1081_v11 = vshll.u32 %v2173_v59, %v1072_v50  ;;  %v1082_v12 = vshrl.u32 %v2174_v61, %v1073_v62  ;;  %v1077_v15 = vor.u32 %v1076_v23, %v1075_v19 }
 0x117   :  { %v415_v9 = vsel %vm332_vm15, %v414_v5, %v413_v54  ;;  %v287_v29 = vadd.s32 536870912, %v286_v7  ;;  %v1241_v13 = vor.u32 4788187, %v1240_v43  ;;  %v1084_v16 = vshll.u32 %v2174_v61, %v1072_v50 }
 0x118   :  { %v418_v49 = vsel %vm2383_vm0, %v2259_v17, %v415_v9  ;;  %v1244_v48 = vcvt.s32.f32 %v1237_v41  ;;  %v1085_v4 = vshrl.u32 %v2175_v63, %v1073_v62  ;;  %v1080_v14 = vor.u32 %v1079_v60, %v1078_v46 }
 0x119   :  { %2107 = vcosq.f32 %v418_v49  ;;  %v2487_v25 = vshrl.u32 %v287_v29, 30  ;;  %v1242_v56 = vand.u32 2147483647, %v1241_v13  ;;  %v1088_v26 = vshrl.u32 %v2176_v6, %v1073_v62 }
 0x11a   :  { %2109 = vsinq.f32 %v418_v49  ;;  %v1086_v37 = vor.u32 %v1085_v4, %v1084_v16  ;;  %v1083_v39 = vor.u32 %v1082_v12, %v1081_v11  ;;  %v1087_v45 = vshll.u32 %v2175_v63, %v1072_v50 }
 0x11b   :  { %v289_v34 = vshll.u32 %v2487_v25, 30  ;;  %v1245_v51 = vmul.f32 %v1244_v48, %v1242_v56  ;;  %v1255_v27 = vadd.s32 3, %v1251_v10  ;;  %vm1090_vm11 = vcmp.lt.s32.totalorder %v2471_v58, 1 }
 0x11c   :  { %v2498_v52 = vshll.u32 %v1066_v8, 8  ;;  %vm426_vm12 = vcmp.eq.s32.totalorder %v2461_v36, 0  ;;  %v1089_v47 = vor.u32 %v1088_v26, %v1087_v45  ;;  %vm1093_vm13 = vcmp.lt.s32.totalorder %v2471_v58, 4 }
 0x11d   :  { %v2493_v30 = vsub.s32 %v286_v7, %v289_v34  ;;  %v1246_v54 = vxor.u32 2147483648, %v1245_v51  ;;  %v1098_v44 = vsel %vm1090_vm11, %v1077_v15, %v1080_v14  ;;  %vm425_vm14 = vcmp.lt.s32.totalorder %v2461_v36, 2 }
 0x11e   :  { %vm1890_vm15 = vcmask 760832   ;;  %v1074_v10 = vshrl.u32 %v2171_v53, %v1073_v62  ;;  %vm1092_vm0 = vcmp.lt.s32.totalorder %v2471_v58, 3  ;;  %v1099_v55 = vsel %vm1093_vm13, %v1086_v37, 920167782 }
 0x11f   :  { %v292_v50 = vsub.s32 0, %v2493_v30  ;;  %vm422_vm1 = vweird.f32 %v2259_v17  ;;  %v1247_v8 = vsel %vm1164_vm4, %v1246_v54, %v1245_v51  ;;  %vm228_vm2 = vcmp.lt.s32.totalorder %v2265_v21, 0  ;;  %v2563_v51 = vpop.f32.mrb[5].mxu0 }
 0x120   :  { %vm1091_vm3 = vcmp.lt.s32.totalorder %v2471_v58, 2  ;;  %v1095_v1 = vsel %vm1093_vm13, %v1083_v39, 2102212464  ;;  %v1100_v62 = vsel %vm1092_vm0, %v1083_v39, %v1099_v55  ;;  %v1250_v2 = vsel %vm2426_vm7, %v2261_v18, %v1247_v8 }
 0x121   :  { %v1929_v3 = vmin.u32 %v292_v50, %v2493_v30  ;;  %v1101_v5 = vsel %vm1091_vm3, %v1098_v44, %v1100_v62  ;;  %v1102_v7 = vsel %vm1090_vm11, %v1080_v14, %v1083_v39  ;;  %2111 = vcosq.f32 %v1250_v2 }
 0x122   :  { %v1103_v19 = vsel %vm1093_vm13, %v1089_v47, 1326507024  ;;  %v2530_v23 = vmul.u32.u64.low %v2498_v52, %v1101_v5  ;;  %v2531_v41 = vmul.u32.u64.high %v2498_v52, %v1101_v5, %v2530_v23  ;;  %vm429_vm4 = vcmp.eq.s32.totalorder %v2461_v36, 2 }
 0x123   :  { %v2108_v43 = vpop.eup %2107  ;;  %2113 = vsinq.f32 %v1250_v2  ;;  %v2535_v0 = vand.u32 3, %v1255_v27  ;;  %vm2539_vm5 = vcmp.le.f32.partialorder %v226_v40, 0.7853982  ;;  %v294_v60 = vclz %v1929_v3 }
 0x124   :  { %v2110_v9 = vpop.eup %2109  ;;  %v430_v29 = vxor.u32 2147483648, %v2108_v43  ;;  %v1094_v11 = vsel %vm1090_vm11, %v1074_v10, %v1077_v15  ;;  %v1096_v12 = vsel %vm1092_vm0, %v1080_v14, %v1095_v1  ;;  %v1104_v49 = vsel %vm1092_vm0, %v1086_v37, %v1103_v19 }
 0x125   :  { %v427_v13 = vxor.u32 2147483648, %v2110_v9  ;;  %v1930_v16 = vadd.s32 4294967294, %v294_v60  ;;  %v312_v48 = vsub.s32 4, %v2487_v25  ;;  %v1105_v40 = vsel %vm1091_vm3, %v1102_v7, %v1104_v49 }
 0x126   :  { %v431_v4 = vsel %vm429_vm4, %v430_v29, %v2110_v9  ;;  %v282_v56 = vadd.s32 %v2451_v24, %v2448_v20  ;;  %v2555_v26 = vmul.u32.u64.low %v2498_v52, %v1105_v40  ;;  %v2556_v15 = vmul.u32.u64.high %v2498_v52, %v1105_v40, %v2555_v26 }
 0x127   :  { %v428_v14 = vsel %vm426_vm12, %v2108_v43, %v427_v13  ;;  %vm1931_vm6 = vcmp.lt.s32.totalorder %v1930_v16, 0  ;;  %v1097_v34 = vsel %vm1091_vm3, %v1094_v11, %v1096_v12  ;;  %v1116_v37 = vadd.s32 1, %v2531_v41 }
 0x128   :  { %v432_v39 = vsel %vm425_vm14, %v428_v14, %v431_v4  ;;  %vm1257_vm7 = vcmp.lt.s32.totalorder %v2535_v0, 2  ;;  %v297_v20 = vsel %vm1931_vm6, 0, %v1930_v16  ;;  %v538_v24 = vand.u32 2147483647, %v2276_v31 }
 0x129   :  { %v541_v45 = vand.u32 2139095040, %v2276_v31  ;;  %v433_v27 = vsel %vm422_vm1, nan, %v432_v39  ;;  %vm1254_vm8 = vweird.f32 %v2261_v18  ;;  %v298_v58 = vsub.s32 32, %v297_v20 }
 0x12a   :  { %v302_v54 = vsub.s32 4294967266, %v297_v20  ;;  %v313_v47 = vsel %vm228_vm2, %v312_v48, %v2487_v25  ;;  %1892 = vst.msk [vmem:[%s3527_s2 + $0x8] sm:$0xff] %vm1890_vm15, %v433_v27  ;;  %vm1258_vm9 = vcmp.eq.s32.totalorder %v2535_v0, 0  ;;  %v1113_v36 = vmul.u32 %v2498_v52, %v1097_v34 }
 0x12b   :  { %vm1115_vm10 = vc.u32 %v2556_v15, %v2530_v23  ;;  %v542_v17 = vshrl.u32 %v541_v45, 23  ;;  %v299_v44 = vshll.u32 %v2493_v30, %v297_v20  ;;  %v300_v50 = vshrl.u32 %v282_v56, %v298_v58  ;;  %v2112_v25 = vpop.eup %2111 }
 0x12c   :  { %v303_v10 = vadd.s32 127, %v302_v54  ;;  %v1117_v55 = vsel %vm1115_vm10, %v1116_v37, %v2531_v41  ;;  %v315_v8 = vsel %vm2539_vm5, 0, %v313_v47  ;;  %v545_v2 = vand.u32 8388607, %v538_v24 }
 0x12d   :  { %v1118_v1 = vadd.s32 %v1117_v55, %v1113_v36  ;;  %v1940_v62 = vadd.s32 4294967169, %v542_v17  ;;  %v2114_v52 = vpop.eup %2113  ;;  %vm1261_vm11 = vcmp.eq.s32.totalorder %v2535_v0, 2  ;;  %v1262_v3 = vxor.u32 2147483648, %v2112_v25 }
 0x12e   :  { %v301_v5 = vor.u32 %v300_v50, %v299_v44  ;;  %v304_v7 = vshll.u32 %v303_v10, 23  ;;  %v1259_v30 = vxor.u32 2147483648, %v2114_v52  ;;  %v1370_v41 = vand.u32 2147483647, %v2278_v32 }
 0x12f   :  { %v1119_v19 = vadd.s32 536870912, %v1118_v1  ;;  %v548_v43 = vadd.s32 1, %v1940_v62  ;;  %v1263_v60 = vsel %vm1261_vm11, %v1262_v3, %v2114_v52  ;;  %v319_v29 = vadd.s32 3, %v315_v8 }
 0x130   :  { %v305_v9 = vor.u32 4788187, %v304_v7  ;;  %v1373_v11 = vand.u32 2139095040, %v2278_v32  ;;  %v1260_v12 = vsel %vm1258_vm9, %v2112_v25, %v1259_v30  ;;  %v546_v13 = vor.u32 8388608, %v545_v2 }
 0x131   :  { %v1120_v49 = vshrl.u32 %v1119_v19, 30  ;;  %vm549_vm12 = vcmp.gt.s32.totalorder %v548_v43, 0  ;;  %v1264_v16 = vsel %vm1257_vm7, %v1260_v12, %v1263_v60  ;;  %v308_v40 = vcvt.s32.f32 %v301_v5 }
 0x132   :  { %v306_v48 = vand.u32 2147483647, %v305_v9  ;;  %v550_v4 = vsel %vm549_vm12, %v548_v43, 0  ;;  %v1265_v56 = vsel %vm1254_vm8, nan, %v1264_v16  ;;  %v1374_v14 = vshrl.u32 %v1373_v11, 23 }
 0x133   :  { %v1121_v26 = vshll.u32 %v1120_v49, 30  ;;  %v2601_v34 = vand.u32 8388607, %v1370_v41  ;;  %1900 = vst.msk [vmem:[%s3527_s2 + $0x48] sm:$0xff] %vm1890_vm15, %v1265_v56  ;;  %v552_v0 = vand.u32 31, %v550_v4  ;;  %v2607_v39 = vand.u32 3, %v319_v29 }
 0x134   :  { %v309_v37 = vmul.f32 %v308_v40, %v306_v48  ;;  %vm1060_vm13 = vcmp.lt.s32.totalorder %v2267_v22, 0  ;;  %v1114_v18 = vadd.s32 %v2530_v23, %v2556_v15  ;;  %v1144_v27 = vsub.s32 4, %v1120_v49  ;;  %v2664_v56 = vpop.f32.mrb[5].mxu1 }
 0x135   :  { %v2612_v20 = vsub.s32 %v1118_v1, %v1121_v26  ;;  %v2614_v58 = vshrl.u32 %v550_v4, 5  ;;  %v553_v54 = vsub.s32 32, %v552_v0  ;;  %v2617_v36 = vshll.u32 %v546_v13, 8 }
 0x136   :  { %v310_v45 = vxor.u32 2147483648, %v309_v37  ;;  %v1972_v17 = vadd.s32 4294967169, %v1374_v14  ;;  %v1378_v44 = vor.u32 8388608, %v2601_v34  ;;  %v555_v10 = vshll.u32 %v2171_v53, %v552_v0 }
 0x137   :  { %v1124_v47 = vsub.s32 0, %v2612_v20  ;;  %v556_v23 = vshrl.u32 %v2172_v57, %v553_v54  ;;  %v559_v15 = vshrl.u32 %v2173_v59, %v553_v54  ;;  %v558_v8 = vshll.u32 %v2172_v57, %v552_v0 }
 0x138   :  { %v311_v50 = vsel %vm228_vm2, %v310_v45, %v309_v37  ;;  %v562_v1 = vshrl.u32 %v2174_v61, %v553_v54  ;;  %v2633_v62 = vsel %vm1060_vm13, %v1144_v27, %v1120_v49  ;;  %v561_v2 = vshll.u32 %v2173_v59, %v552_v0 }
 0x139   :  { %v314_v55 = vsel %vm2539_vm5, %v2265_v21, %v311_v50  ;;  %v1961_v25 = vmin.u32 %v1124_v47, %v2612_v20  ;;  %vm570_vm14 = vcmp.lt.s32.totalorder %v2614_v58, 1  ;;  %v557_v3 = vor.u32 %v556_v23, %v555_v10 }
 0x13a   :  { %2115 = vcosq.f32 %v314_v55  ;;  %v560_v46 = vor.u32 %v559_v15, %v558_v8  ;;  %v554_v5 = vshrl.u32 %v2171_v53, %v553_v54  ;;  %v563_v7 = vor.u32 %v562_v1, %v561_v2 }
 0x13b   :  { %2117 = vsinq.f32 %v314_v55  ;;  %v1126_v52 = vclz %v1961_v25  ;;  %v564_v30 = vshll.u32 %v2174_v61, %v552_v0  ;;  %v565_v19 = vshrl.u32 %v2175_v63, %v553_v54 }
 0x13c   :  { %vm2642_vm0 = vcmp.le.f32.partialorder %v1058_v33, 0.7853982  ;;  %v567_v9 = vshll.u32 %v2175_v63, %v552_v0  ;;  %v568_v29 = vshrl.u32 %v2176_v6, %v553_v54  ;;  %vm573_vm1 = vcmp.lt.s32.totalorder %v2614_v58, 4 }
 0x13d   :  { %v1962_v60 = vadd.s32 4294967294, %v1126_v52  ;;  %vm325_vm2 = vcmp.eq.s32.totalorder %v2607_v39, 2  ;;  %v566_v11 = vor.u32 %v565_v19, %v564_v30  ;;  %vm571_vm3 = vcmp.lt.s32.totalorder %v2614_v58, 2 }
 0x13e   :  { %vm572_vm4 = vcmp.lt.s32.totalorder %v2614_v58, 3  ;;  %v575_v33 = vsel %vm573_vm1, %v563_v7, 2102212464  ;;  %vm322_vm5 = vcmp.eq.s32.totalorder %v2607_v39, 0  ;;  %v569_v12 = vor.u32 %v568_v29, %v567_v9 }
 0x13f   :  { %vm1963_vm6 = vcmp.lt.s32.totalorder %v1962_v60, 0  ;;  %v574_v49 = vsel %vm570_vm14, %v554_v5, %v557_v3  ;;  %v578_v13 = vsel %vm570_vm14, %v557_v3, %v560_v46  ;;  %vm321_vm7 = vcmp.lt.s32.totalorder %v2607_v39, 2 }
 0x140   :  { %v1129_v16 = vsel %vm1963_vm6, 0, %v1962_v60  ;;  %v576_v48 = vsel %vm572_vm4, %v560_v46, %v575_v33  ;;  %v579_v40 = vsel %vm573_vm1, %v566_v11, 920167782  ;;  %v1380_v4 = vadd.s32 1, %v1972_v17 }
 0x141   :  { %vm318_vm8 = vweird.f32 %v2265_v21  ;;  %v1130_v26 = vsub.s32 32, %v1129_v16  ;;  %v1134_v14 = vsub.s32 4294967266, %v1129_v16  ;;  %v580_v37 = vsel %vm572_vm4, %v563_v7, %v579_v40 }
 0x142   :  { %v582_v0 = vsel %vm570_vm14, %v560_v46, %v563_v7  ;;  %v1131_v45 = vshll.u32 %v2612_v20, %v1129_v16  ;;  %v581_v27 = vsel %vm571_vm3, %v578_v13, %v580_v37  ;;  %v583_v54 = vsel %vm573_vm1, %v569_v12, 1326507024 }
 0x143   :  { %vm1381_vm9 = vcmp.gt.s32.totalorder %v1380_v4, 0  ;;  %v1132_v47 = vshrl.u32 %v1114_v18, %v1130_v26  ;;  %v1135_v17 = vadd.s32 127, %v1134_v14  ;;  %v584_v50 = vsel %vm572_vm4, %v566_v11, %v583_v54 }
 0x144   :  { %v1382_v10 = vsel %vm1381_vm9, %v1380_v4, 0  ;;  %v2116_v23 = vpop.eup %2115  ;;  %v577_v15 = vsel %vm571_vm3, %v574_v49, %v576_v48  ;;  %v585_v20 = vsel %vm571_vm3, %v582_v0, %v584_v50  ;;  %v1147_v46 = vsel %vm2642_vm0, 0, %v2633_v62 }
 0x145   :  { %v2683_v55 = vmul.u32.u64.low %v2617_v36, %v581_v27  ;;  %v2684_v25 = vmul.u32.u64.high %v2617_v36, %v581_v27, %v2683_v55  ;;  %v2118_v8 = vpop.eup %2117  ;;  %v326_v1 = vxor.u32 2147483648, %v2116_v23  ;;  %v1133_v18 = vor.u32 %v1132_v47, %v1131_v45 }
 0x146   :  { %v1136_v2 = vshll.u32 %v1135_v17, 23  ;;  %v1384_v52 = vand.u32 31, %v1382_v10  ;;  %v323_v3 = vxor.u32 2147483648, %v2118_v8  ;;  %v593_v19 = vmul.u32 %v2617_v36, %v577_v15 }
 0x147   :  { %v2691_v5 = vmul.u32.u64.low %v2617_v36, %v585_v20  ;;  %v2692_v7 = vmul.u32.u64.high %v2617_v36, %v585_v20, %v2691_v5  ;;  %v327_v58 = vsel %vm325_vm2, %v326_v1, %v2118_v8  ;;  %v1140_v29 = vcvt.s32.f32 %v1133_v18 }
 0x148   :  { %v1137_v30 = vor.u32 4788187, %v1136_v2  ;;  %v1385_v60 = vsub.s32 32, %v1384_v52  ;;  %v324_v9 = vsel %vm322_vm5, %v2116_v23, %v323_v3  ;;  %v596_v11 = vadd.s32 1, %v2684_v25 }
 0x149   :  { %v1383_v33 = vshrl.u32 %v1382_v10, 5  ;;  %v328_v62 = vsel %vm321_vm7, %v324_v9, %v327_v58  ;;  %v1387_v49 = vshll.u32 %v2171_v53, %v1384_v52  ;;  %vm595_vm10 = vc.u32 %v2692_v7, %v2683_v55 }
 0x14a   :  { %v1138_v12 = vand.u32 2147483647, %v1137_v30  ;;  %v1388_v13 = vshrl.u32 %v2172_v57, %v1385_v60  ;;  %v329_v16 = vsel %vm318_vm8, nan, %v328_v62  ;;  %v1390_v36 = vshll.u32 %v2172_v57, %v1384_v52 }
 0x14b   :  { %v1391_v48 = vshrl.u32 %v2173_v59, %v1385_v60  ;;  %1891 = vst.msk [vmem:[%s3527_s2] sm:$0xff] %vm1890_vm15, %v329_v16  ;;  %v597_v40 = vsel %vm595_vm10, %v596_v11, %v2684_v25  ;;  %v1393_v26 = vshll.u32 %v2173_v59, %v1384_v52  ;;  %v1394_v37 = vshrl.u32 %v2174_v61, %v1385_v60 }
 0x14c   :  { %v1141_v39 = vmul.f32 %v1140_v29, %v1138_v12  ;;  %v1389_v4 = vor.u32 %v1388_v13, %v1387_v49  ;;  %v598_v21 = vadd.s32 %v597_v40, %v593_v19  ;;  %v1396_v0 = vshll.u32 %v2174_v61, %v1384_v52 }
 0x14d   :  { %v1392_v14 = vor.u32 %v1391_v48, %v1390_v36  ;;  %v1397_v27 = vshrl.u32 %v2175_v63, %v1385_v60  ;;  %v1399_v54 = vshll.u32 %v2175_v63, %v1384_v52  ;;  %v1400_v47 = vshrl.u32 %v2176_v6, %v1385_v60 }
 0x14e   :  { %v1142_v45 = vxor.u32 2147483648, %v1141_v39  ;;  %v1151_v17 = vadd.s32 3, %v1147_v46  ;;  %v599_v50 = vadd.s32 536870912, %v598_v21  ;;  %v1395_v10 = vor.u32 %v1394_v37, %v1393_v26 }
 0x14f   :  { %vm1402_vm11 = vcmp.lt.s32.totalorder %v1383_v33, 1  ;;  %v1386_v15 = vshrl.u32 %v2171_v53, %v1385_v60  ;;  %v1398_v20 = vor.u32 %v1397_v27, %v1396_v0  ;;  %v1401_v25 = vor.u32 %v1400_v47, %v1399_v54 }
 0x150   :  { %v1143_v23 = vsel %vm1060_vm13, %v1142_v45, %v1141_v39  ;;  %v600_v1 = vshrl.u32 %v599_v50, 30  ;;  %vm1403_vm12 = vcmp.lt.s32.totalorder %v1383_v33, 2  ;;  %vm1405_vm14 = vcmp.lt.s32.totalorder %v1383_v33, 4 }
 0x151   :  { %v1146_v8 = vsel %vm2642_vm0, %v2267_v22, %v1143_v23  ;;  %v1407_v18 = vsel %vm1405_vm14, %v1395_v10, 2102212464  ;;  %v1410_v2 = vsel %vm1402_vm11, %v1389_v4, %v1392_v14  ;;  %v1411_v52 = vsel %vm1405_vm14, %v1398_v20, 920167782 }
 0x152   :  { %2119 = vcosq.f32 %v1146_v8  ;;  %v601_v3 = vshll.u32 %v600_v1, 30  ;;  %vm1404_vm1 = vcmp.lt.s32.totalorder %v1383_v33, 3  ;;  %v1406_v46 = vsel %vm1402_vm11, %v1386_v15, %v1389_v4 }
 0x153   :  { %2121 = vsinq.f32 %v1146_v8  ;;  %v1412_v5 = vsel %vm1404_vm1, %v1395_v10, %v1411_v52  ;;  %v1414_v58 = vsel %vm1402_vm11, %v1392_v14, %v1395_v10  ;;  %v1415_v30 = vsel %vm1405_vm14, %v1401_v25, 1326507024 }
 0x154   :  { %v1418_v43 = vshll.u32 %v1378_v44, 8  ;;  %v2732_v19 = vsub.s32 %v598_v21, %v601_v3  ;;  %v1408_v60 = vsel %vm1404_vm1, %v1392_v14, %v1407_v18  ;;  %v1413_v9 = vsel %vm1403_vm12, %v1410_v2, %v1412_v5 }
 0x155   :  { %v1416_v29 = vsel %vm1404_vm1, %v1398_v20, %v1415_v30  ;;  %v624_v11 = vsub.s32 4, %v600_v1  ;;  %v1152_v13 = vand.u32 3, %v1151_v17  ;;  %vm540_vm13 = vcmp.lt.s32.totalorder %v2276_v31, 0 }
 0x156   :  { %v1417_v62 = vsel %vm1403_vm12, %v1414_v58, %v1416_v29  ;;  %v2736_v12 = vmul.u32.u64.low %v1418_v43, %v1413_v9  ;;  %v2737_v49 = vmul.u32.u64.high %v1418_v43, %v1413_v9, %v2736_v12  ;;  %v604_v16 = vsub.s32 0, %v2732_v19 }
 0x157   :  { %v2741_v36 = vmul.u32.u64.low %v1418_v43, %v1417_v62  ;;  %v2742_v48 = vmul.u32.u64.high %v1418_v43, %v1417_v62, %v2741_v36  ;;  %v1409_v44 = vsel %vm1403_vm12, %v1406_v46, %v1408_v60  ;;  %v437_v39 = vand.u32 2139095040, %v2280_v35 }
 0x158   :  { %v1941_v34 = vmin.u32 %v604_v16, %v2732_v19  ;;  %vm1150_vm0 = vweird.f32 %v2267_v22  ;;  %v625_v40 = vsel %vm540_vm13, %v624_v11, %v600_v1  ;;  %v1428_v4 = vadd.s32 1, %v2737_v49 }
 0x159   :  { %v434_v26 = vand.u32 2147483647, %v2280_v35  ;;  %vm1153_vm2 = vcmp.lt.s32.totalorder %v1152_v13, 2  ;;  %vm1154_vm3 = vcmp.eq.s32.totalorder %v1152_v13, 0  ;;  %vm2755_vm4 = vcmp.le.f32.partialorder %v538_v24, 0.7853982 }
 0x15a   :  { %v606_v33 = vclz %v1941_v34  ;;  %vm1157_vm5 = vcmp.eq.s32.totalorder %v1152_v13, 2  ;;  %v1425_v37 = vmul.u32 %v1418_v43, %v1409_v44  ;;  %vm1427_vm6 = vc.u32 %v2742_v48, %v2736_v12  ;;  %v2764_v24 = vpop.f32.mrb[6].mxu0 }
 0x15b   :  { %v438_v0 = vshrl.u32 %v437_v39, 23  ;;  %v627_v47 = vsel %vm2755_vm4, 0, %v625_v40  ;;  %v1429_v17 = vsel %vm1427_vm6, %v1428_v4, %v2737_v49  ;;  %v441_v15 = vand.u32 8388607, %v434_v26 }
 0x15c   :  { %v2120_v14 = vpop.eup %2119  ;;  %v1942_v54 = vadd.s32 4294967294, %v606_v33  ;;  %v1430_v10 = vadd.s32 %v1429_v17, %v1425_v37  ;;  %v594_v25 = vadd.s32 %v2683_v55, %v2692_v7  ;;  %v1269_v8 = vand.u32 2139095040, %v2283_v42 }
 0x15d   :  { %v2122_v45 = vpop.eup %2121  ;;  %v1158_v27 = vxor.u32 2147483648, %v2120_v14  ;;  %v1936_v23 = vadd.s32 4294967169, %v438_v0  ;;  %v631_v58 = vadd.s32 3, %v627_v47  ;;  %v442_v60 = vor.u32 8388608, %v441_v15 }
 0x15e   :  { %v1155_v50 = vxor.u32 2147483648, %v2122_v45  ;;  %vm1943_vm7 = vcmp.lt.s32.totalorder %v1942_v54, 0  ;;  %v1431_v2 = vadd.s32 536870912, %v1430_v10  ;;  %v1270_v49 = vshrl.u32 %v1269_v8, 23 }
 0x15f   :  { %v1159_v20 = vsel %vm1157_vm5, %v1158_v27, %v2122_v45  ;;  %v609_v18 = vsel %vm1943_vm7, 0, %v1942_v54  ;;  %v444_v52 = vadd.s32 1, %v1936_v23  ;;  %v2780_v22 = vand.u32 3, %v631_v58 }
 0x160   :  { %v1156_v1 = vsel %vm1154_vm3, %v2120_v14, %v1155_v50  ;;  %v610_v46 = vsub.s32 32, %v609_v18  ;;  %v614_v5 = vsub.s32 4294967266, %v609_v18  ;;  %v1432_v43 = vshrl.u32 %v1431_v2, 30 }
 0x161   :  { %v1160_v3 = vsel %vm1153_vm2, %v1156_v1, %v1159_v20  ;;  %vm445_vm8 = vcmp.gt.s32.totalorder %v444_v52, 0  ;;  %v611_v55 = vshll.u32 %v2732_v19, %v609_v18  ;;  %vm1372_vm9 = vcmp.lt.s32.totalorder %v2278_v32, 0 }
 0x162   :  { %v1161_v30 = vsel %vm1150_vm0, nan, %v1160_v3  ;;  %v612_v7 = vshrl.u32 %v594_v25, %v610_v46  ;;  %v615_v9 = vadd.s32 127, %v614_v5  ;;  %v446_v29 = vsel %vm445_vm8, %v444_v52, 0 }
 0x163   :  { %1899 = vst.msk [vmem:[%s3527_s2 + $0x40] sm:$0xff] %vm1890_vm15, %v1161_v30  ;;  %v1433_v11 = vshll.u32 %v1432_v43, 30  ;;  %v448_v62 = vand.u32 31, %v446_v29  ;;  %v1426_v39 = vadd.s32 %v2736_v12, %v2742_v48  ;;  %v1456_v19 = vsub.s32 4, %v1432_v43 }
 0x164   :  { %v613_v13 = vor.u32 %v612_v7, %v611_v55  ;;  %v616_v16 = vshll.u32 %v615_v9, 23  ;;  %v2787_v40 = vshll.u32 %v442_v60, 8  ;;  %v447_v33 = vshrl.u32 %v446_v29, 5 }
 0x165   :  { %v2783_v36 = vsub.s32 %v1430_v10, %v1433_v11  ;;  %v449_v34 = vsub.s32 32, %v448_v62  ;;  %v1968_v37 = vadd.s32 4294967169, %v1270_v49  ;;  %v451_v17 = vshll.u32 %v2171_v53, %v448_v62 }
 0x166   :  { %v617_v44 = vor.u32 4788187, %v616_v16  ;;  %v620_v45 = vcvt.s32.f32 %v613_v13  ;;  %v454_v12 = vshll.u32 %v2172_v57, %v448_v62  ;;  %v457_v48 = vshll.u32 %v2173_v59, %v448_v62 }
 0x167   :  { %v1436_v4 = vsub.s32 0, %v2783_v36  ;;  %v452_v14 = vshrl.u32 %v2172_v57, %v449_v34  ;;  %v455_v27 = vshrl.u32 %v2173_v59, %v449_v34  ;;  %v458_v54 = vshrl.u32 %v2174_v61, %v449_v34 }
 0x168   :  { %v618_v0 = vand.u32 2147483647, %v617_v44  ;;  %v2799_v10 = vsel %vm1372_vm9, %v1456_v19, %v1432_v43  ;;  %v460_v23 = vshll.u32 %v2174_v61, %v448_v62  ;;  %v461_v15 = vshrl.u32 %v2175_v63, %v449_v34  ;;  %v2820_v44 = vpop.f32.mrb[6].mxu1 }
 0x169   :  { %v1973_v47 = vmin.u32 %v1436_v4, %v2783_v36  ;;  %v453_v25 = vor.u32 %v452_v14, %v451_v17  ;;  %v456_v8 = vor.u32 %v455_v27, %v454_v12  ;;  %v459_v1 = vor.u32 %v458_v54, %v457_v48 }
 0x16a   :  { %v621_v50 = vmul.f32 %v620_v45, %v618_v0  ;;  %v462_v2 = vor.u32 %v461_v15, %v460_v23  ;;  %v463_v52 = vshll.u32 %v2175_v63, %v448_v62  ;;  %v464_v3 = vshrl.u32 %v2176_v6, %v449_v34 }
 0x16b   :  { %v1438_v20 = vclz %v1973_v47  ;;  %v450_v5 = vshrl.u32 %v2171_v53, %v449_v34  ;;  %vm466_vm10 = vcmp.lt.s32.totalorder %v447_v33, 1  ;;  %vm467_vm11 = vcmp.lt.s32.totalorder %v447_v33, 2 }
 0x16c   :  { %v622_v18 = vxor.u32 2147483648, %v621_v50  ;;  %v465_v30 = vor.u32 %v464_v3, %v463_v52  ;;  %vm468_vm12 = vcmp.lt.s32.totalorder %v447_v33, 3  ;;  %vm469_vm14 = vcmp.lt.s32.totalorder %v447_v33, 4 }
 0x16d   :  { %v1974_v46 = vadd.s32 4294967294, %v1438_v20  ;;  %v470_v60 = vsel %vm466_vm10, %v450_v5, %v453_v25  ;;  %v471_v55 = vsel %vm469_vm14, %v459_v1, 2102212464  ;;  %v474_v9 = vsel %vm466_vm10, %v453_v25, %v456_v8 }
 0x16e   :  { %v623_v58 = vsel %vm540_vm13, %v622_v18, %v621_v50  ;;  %v475_v29 = vsel %vm469_vm14, %v462_v2, 920167782  ;;  %v472_v49 = vsel %vm468_vm12, %v456_v8, %v471_v55  ;;  %v478_v16 = vsel %vm466_vm10, %v456_v8, %v459_v1 }
 0x16f   :  { %v626_v43 = vsel %vm2755_vm4, %v2276_v31, %v623_v58  ;;  %vm1975_vm1 = vcmp.lt.s32.totalorder %v1974_v46, 0  ;;  %v476_v21 = vsel %vm468_vm12, %v459_v1, %v475_v29  ;;  %v479_v34 = vsel %vm469_vm14, %v465_v30, 1326507024 }
 0x170   :  { %2123 = vcosq.f32 %v626_v43  ;;  %v1441_v7 = vsel %vm1975_vm1, 0, %v1974_v46  ;;  %v477_v14 = vsel %vm467_vm11, %v474_v9, %v476_v21  ;;  %v480_v0 = vsel %vm468_vm12, %v462_v2, %v479_v34 }
 0x171   :  { %2125 = vsinq.f32 %v626_v43  ;;  %v1442_v11 = vsub.s32 32, %v1441_v7  ;;  %v1446_v62 = vsub.s32 4294967266, %v1441_v7  ;;  %v1443_v13 = vshll.u32 %v2783_v36, %v1441_v7 }
 0x172   :  { %v473_v45 = vsel %vm467_vm11, %v470_v60, %v472_v49  ;;  %v481_v27 = vsel %vm467_vm11, %v478_v16, %v480_v0  ;;  %v2827_v36 = vmul.u32.u64.low %v2787_v40, %v477_v14  ;;  %v2828_v54 = vmul.u32.u64.high %v2787_v40, %v477_v14, %v2827_v36 }
 0x173   :  { %v1444_v19 = vshrl.u32 %v1426_v39, %v1442_v11  ;;  %v1447_v4 = vadd.s32 127, %v1446_v62  ;;  %v2832_v12 = vmul.u32.u64.low %v2787_v40, %v481_v27  ;;  %v2833_v48 = vmul.u32.u64.high %v2787_v40, %v481_v27, %v2832_v12 }
 0x174   :  { %vm2837_vm13 = vcmp.le.f32.partialorder %v1370_v41, 0.7853982  ;;  %v1276_v50 = vadd.s32 1, %v1968_v37  ;;  %vm630_vm0 = vweird.f32 %v2276_v31  ;;  %vm633_vm2 = vcmp.lt.s32.totalorder %v2780_v22, 2 }
 0x175   :  { %v1445_v47 = vor.u32 %v1444_v19, %v1443_v13  ;;  %v1448_v17 = vshll.u32 %v1447_v4, 23  ;;  %v1266_v23 = vand.u32 2147483647, %v2283_v42  ;;  %v1459_v15 = vsel %vm2837_vm13, 0, %v2799_v10 }
 0x176   :  { %v489_v20 = vmul.u32 %v2787_v40, %v473_v45  ;;  %v492_v25 = vadd.s32 1, %v2828_v54  ;;  %vm1277_vm3 = vcmp.gt.s32.totalorder %v1276_v50, 0  ;;  %vm491_vm4 = vc.u32 %v2833_v48, %v2827_v36 }
 0x177   :  { %v1449_v33 = vor.u32 4788187, %v1448_v17  ;;  %v1452_v8 = vcvt.s32.f32 %v1445_v47  ;;  %v1278_v37 = vsel %vm1277_vm3, %v1276_v50, 0  ;;  %vm634_vm5 = vcmp.eq.s32.totalorder %v2780_v22, 0 }
 0x178   :  { %vm637_vm6 = vcmp.eq.s32.totalorder %v2780_v22, 2  ;;  %v493_v18 = vsel %vm491_vm4, %v492_v25, %v2828_v54  ;;  %v1280_v2 = vand.u32 31, %v1278_v37  ;;  %v1273_v46 = vand.u32 8388607, %v1266_v23 }
 0x179   :  { %v1450_v41 = vand.u32 2147483647, %v1449_v33  ;;  %v494_v3 = vadd.s32 %v493_v18, %v489_v20  ;;  %v1463_v58 = vadd.s32 3, %v1459_v15  ;;  %v749_v43 = vand.u32 2139095040, %v2363_v38 }
 0x17a   :  { %v2124_v1 = vpop.eup %2123  ;;  %v1281_v30 = vsub.s32 32, %v1280_v2  ;;  %v1283_v9 = vshll.u32 %v2171_v53, %v1280_v2  ;;  %v1286_v62 = vshll.u32 %v2172_v57, %v1280_v2  ;;  %v1279_v14 = vshrl.u32 %v1278_v37, 5 }
 0x17b   :  { %v2126_v10 = vpop.eup %2125  ;;  %v638_v52 = vxor.u32 2147483648, %v2124_v1  ;;  %v1453_v40 = vmul.f32 %v1452_v8, %v1450_v41  ;;  %v495_v7 = vadd.s32 536870912, %v494_v3  ;;  %v1289_v0 = vshll.u32 %v2173_v59, %v1280_v2 }
 0x17c   :  { %v635_v5 = vxor.u32 2147483648, %v2126_v10  ;;  %v1284_v11 = vshrl.u32 %v2172_v57, %v1281_v30  ;;  %v1287_v49 = vshrl.u32 %v2173_v59, %v1281_v30  ;;  %v1290_v34 = vshrl.u32 %v2174_v61, %v1281_v30 }
 0x17d   :  { %v639_v60 = vsel %vm637_vm6, %v638_v52, %v2126_v10  ;;  %v1454_v55 = vxor.u32 2147483648, %v1453_v40  ;;  %v2867_v16 = vshrl.u32 %v495_v7, 30  ;;  %v1292_v54 = vshll.u32 %v2174_v61, %v1280_v2 }
 0x17e   :  { %v636_v29 = vsel %vm634_vm5, %v2124_v1, %v635_v5  ;;  %v1285_v45 = vor.u32 %v1284_v11, %v1283_v9  ;;  %v1288_v27 = vor.u32 %v1287_v49, %v1286_v62  ;;  %v1291_v31 = vor.u32 %v1290_v34, %v1289_v0 }
 0x17f   :  { %v640_v13 = vsel %vm633_vm2, %v636_v29, %v639_v60  ;;  %v1455_v21 = vsel %vm1372_vm9, %v1454_v55, %v1453_v40  ;;  %v497_v22 = vshll.u32 %v2867_v16, 30  ;;  %v1293_v47 = vshrl.u32 %v2175_v63, %v1281_v30  ;;  %v2898_v55 = vpop.f32.mrb[7].mxu0 }
 0x180   :  { %v641_v19 = vsel %vm630_vm0, nan, %v640_v13  ;;  %v1458_v4 = vsel %vm2837_vm13, %v2278_v32, %v1455_v21  ;;  %v1464_v17 = vand.u32 3, %v1463_v58  ;;  %v1295_v39 = vshll.u32 %v2175_v63, %v1280_v2 }
 0x181   :  { %1894 = vst.msk [vmem:[%s3527_s2 + $0x18] sm:$0xff] %vm1890_vm15, %v641_v19  ;;  %2127 = vcosq.f32 %v1458_v4  ;;  %v2883_v12 = vsub.s32 %v494_v3, %v497_v22  ;;  %v1296_v50 = vshrl.u32 %v2176_v6, %v1281_v30  ;;  %v1274_v33 = vor.u32 8388608, %v1273_v46 }
 0x182   :  { %2129 = vsinq.f32 %v1458_v4  ;;  %v1294_v15 = vor.u32 %v1293_v47, %v1292_v54  ;;  %v746_v20 = vand.u32 2147483647, %v2363_v38  ;;  %v750_v25 = vshrl.u32 %v749_v43, 23 }
 0x183   :  { %v500_v41 = vsub.s32 0, %v2883_v12  ;;  %v1297_v8 = vor.u32 %v1296_v50, %v1295_v39  ;;  %vm1298_vm7 = vcmp.lt.s32.totalorder %v1279_v14, 1  ;;  %vm1301_vm8 = vcmp.lt.s32.totalorder %v1279_v14, 4 }
 0x184   :  { %vm1300_vm9 = vcmp.lt.s32.totalorder %v1279_v14, 3  ;;  %v1303_v37 = vsel %vm1301_vm8, %v1291_v31, 2102212464  ;;  %v1306_v1 = vsel %vm1298_vm7, %v1285_v45, %v1288_v27  ;;  %v1307_v18 = vsel %vm1301_vm8, %v1294_v15, 920167782 }
 0x185   :  { %vm1465_vm10 = vcmp.lt.s32.totalorder %v1464_v17, 2  ;;  %v1937_v2 = vmin.u32 %v500_v41, %v2883_v12  ;;  %v1282_v10 = vshrl.u32 %v2171_v53, %v1281_v30  ;;  %vm1299_vm11 = vcmp.lt.s32.totalorder %v1279_v14, 2 }
 0x186   :  { %v1308_v52 = vsel %vm1300_vm9, %v1291_v31, %v1307_v18  ;;  %vm1462_vm12 = vweird.f32 %v2278_v32  ;;  %v1310_v3 = vsel %vm1298_vm7, %v1288_v27, %v1291_v31  ;;  %v1311_v46 = vsel %vm1301_vm8, %v1297_v8, 1326507024 }
 0x187   :  { %v1309_v40 = vsel %vm1299_vm11, %v1306_v1, %v1308_v52  ;;  %v1314_v5 = vshll.u32 %v1274_v33, 8  ;;  %vm1466_vm14 = vcmp.eq.s32.totalorder %v1464_v17, 0  ;;  %v502_v58 = vclz %v1937_v2 }
 0x188   :  { %v1302_v43 = vsel %vm1298_vm7, %v1282_v10, %v1285_v45  ;;  %v1304_v60 = vsel %vm1300_vm9, %v1288_v27, %v1303_v37  ;;  %vm1469_vm1 = vcmp.eq.s32.totalorder %v1464_v17, 2  ;;  %v1312_v30 = vsel %vm1300_vm9, %v1294_v15, %v1311_v46 }
 0x189   :  { %v2901_v7 = vmul.u32.u64.low %v1314_v5, %v1309_v40  ;;  %v2902_v9 = vmul.u32.u64.high %v1314_v5, %v1309_v40, %v2901_v7  ;;  %v1938_v11 = vadd.s32 4294967294, %v502_v58  ;;  %v1313_v62 = vsel %vm1299_vm11, %v1310_v3, %v1312_v30 }
 0x18a   :  { %v1948_v49 = vadd.s32 4294967169, %v750_v25  ;;  %v2908_v13 = vand.u32 8388607, %v746_v20  ;;  %v1305_v19 = vsel %vm1299_vm11, %v1302_v43, %v1304_v60  ;;  %v490_v45 = vadd.s32 %v2827_v36, %v2833_v48 }
 0x18b   :  { %v2128_v29 = vpop.eup %2127  ;;  %v2911_v4 = vmul.u32.u64.low %v1314_v5, %v1313_v62  ;;  %v2912_v0 = vmul.u32.u64.high %v1314_v5, %v1313_v62, %v2911_v4  ;;  %vm1939_vm13 = vcmp.lt.s32.totalorder %v1938_v11, 0  ;;  %v520_v47 = vsub.s32 4, %v2867_v16 }
 0x18c   :  { %v2130_v21 = vpop.eup %2129  ;;  %v1470_v34 = vxor.u32 2147483648, %v2128_v29  ;;  %v756_v27 = vadd.s32 1, %v1948_v49  ;;  %v505_v54 = vsel %vm1939_vm13, 0, %v1938_v11  ;;  %v1324_v39 = vadd.s32 1, %v2902_v9 }
 0x18d   :  { %v1467_v22 = vxor.u32 2147483648, %v2130_v21  ;;  %v506_v14 = vsub.s32 32, %v505_v54  ;;  %v510_v33 = vsub.s32 4294967266, %v505_v54  ;;  %v1321_v15 = vmul.u32 %v1314_v5, %v1305_v19 }
 0x18e   :  { %v1471_v31 = vsel %vm1469_vm1, %v1470_v34, %v2130_v21  ;;  %v507_v41 = vshll.u32 %v2883_v12, %v505_v54  ;;  %vm1323_vm0 = vc.u32 %v2912_v0, %v2901_v7  ;;  %vm757_vm2 = vcmp.gt.s32.totalorder %v756_v27, 0 }
 0x18f   :  { %v1468_v50 = vsel %vm1466_vm14, %v2128_v29, %v1467_v22  ;;  %v508_v48 = vshrl.u32 %v490_v45, %v506_v14  ;;  %v511_v8 = vadd.s32 127, %v510_v33  ;;  %v1325_v37 = vsel %vm1323_vm0, %v1324_v39, %v2902_v9 }
 0x190   :  { %v1472_v25 = vsel %vm1465_vm10, %v1468_v50, %v1471_v31  ;;  %vm436_vm3 = vcmp.lt.s32.totalorder %v2280_v35, 0  ;;  %v1326_v17 = vadd.s32 %v1325_v37, %v1321_v15  ;;  %v758_v12 = vsel %vm757_vm2, %v756_v27, 0 }
 0x191   :  { %v1473_v36 = vsel %vm1462_vm12, nan, %v1472_v25  ;;  %v509_v1 = vor.u32 %v508_v48, %v507_v41  ;;  %v512_v18 = vshll.u32 %v511_v8, 23  ;;  %v521_v32 = vsel %vm436_vm3, %v520_v47, %v2867_v16 }
 0x192   :  { %1902 = vst.msk [vmem:[%s3527_s2 + $0x58] sm:$0xff] %vm1890_vm15, %v1473_v36  ;;  %v760_v2 = vand.u32 31, %v758_v12  ;;  %v1327_v10 = vadd.s32 536870912, %v1326_v17  ;;  %vm2937_vm4 = vcmp.le.f32.partialorder %v434_v26, 0.7853982  ;;  %v754_v3 = vor.u32 8388608, %v2908_v13 }
 0x193   :  { %v513_v40 = vor.u32 4788187, %v512_v18  ;;  %v516_v5 = vcvt.s32.f32 %v509_v1  ;;  %v523_v58 = vsel %vm2937_vm4, 0, %v521_v32  ;;  %v1581_v60 = vand.u32 2139095040, %v2459_v28 }
 0x194   :  { %v761_v46 = vsub.s32 32, %v760_v2  ;;  %v1328_v43 = vshrl.u32 %v1327_v10, 30  ;;  %vm1268_vm5 = vcmp.lt.s32.totalorder %v2283_v42, 0  ;;  %v763_v30 = vshll.u32 %v2171_v53, %v760_v2 }
 0x195   :  { %v514_v16 = vand.u32 2147483647, %v513_v40  ;;  %v766_v11 = vshll.u32 %v2172_v57, %v760_v2  ;;  %v759_v21 = vshrl.u32 %v758_v12, 5  ;;  %v769_v34 = vshll.u32 %v2173_v59, %v760_v2 }
 0x196   :  { %v764_v26 = vshrl.u32 %v2172_v57, %v761_v46  ;;  %v767_v9 = vshrl.u32 %v2173_v59, %v761_v46  ;;  %v1329_v29 = vshll.u32 %v1328_v43, 30  ;;  %v770_v62 = vshrl.u32 %v2174_v61, %v761_v46 }
 0x197   :  { %v773_v49 = vshrl.u32 %v2175_v63, %v761_v46  ;;  %v517_v13 = vmul.f32 %v516_v5, %v514_v16  ;;  %v772_v19 = vshll.u32 %v2174_v61, %v760_v2  ;;  %v527_v4 = vadd.s32 3, %v523_v58 }
 0x198   :  { %v2954_v22 = vsub.s32 %v1326_v17, %v1329_v29  ;;  %v765_v45 = vor.u32 %v764_v26, %v763_v30  ;;  %v768_v27 = vor.u32 %v767_v9, %v766_v11  ;;  %v771_v54 = vor.u32 %v770_v62, %v769_v34 }
 0x199   :  { %v518_v31 = vxor.u32 2147483648, %v517_v13  ;;  %v774_v47 = vor.u32 %v773_v49, %v772_v19  ;;  %v776_v39 = vshrl.u32 %v2176_v6, %v761_v46  ;;  %v1352_v14 = vsub.s32 4, %v1328_v43 }
 0x19a   :  { %v1332_v50 = vsub.s32 0, %v2954_v22  ;;  %v775_v33 = vshll.u32 %v2175_v63, %v760_v2  ;;  %v2959_v15 = vshll.u32 %v754_v3, 8  ;;  %v762_v41 = vshrl.u32 %v2171_v53, %v761_v46 }
 0x19b   :  { %v519_v25 = vsel %vm436_vm3, %v518_v31, %v517_v13  ;;  %vm778_vm6 = vcmp.lt.s32.totalorder %v759_v21, 1  ;;  %v1582_v36 = vshrl.u32 %v1581_v60, 23  ;;  %vm781_vm7 = vcmp.lt.s32.totalorder %v759_v21, 4 }
 0x19c   :  { %v522_v48 = vsel %vm2937_vm4, %v2280_v35, %v519_v25  ;;  %v1969_v8 = vmin.u32 %v1332_v50, %v2954_v22  ;;  %v777_v37 = vor.u32 %v776_v39, %v775_v33  ;;  %v783_v17 = vsel %vm781_vm7, %v771_v54, 2102212464 }
 0x19d   :  { %2131 = vcosq.f32 %v522_v48  ;;  %v786_v12 = vsel %vm778_vm6, %v765_v45, %v768_v27  ;;  %v787_v1 = vsel %vm781_vm7, %v774_v47, 920167782  ;;  %v1353_v32 = vsel %vm1268_vm5, %v1352_v14, %v1328_v43 }
 0x19e   :  { %2133 = vsinq.f32 %v522_v48  ;;  %v1334_v18 = vclz %v1969_v8  ;;  %vm780_vm8 = vcmp.lt.s32.totalorder %v759_v21, 3  ;;  %vm779_vm9 = vcmp.lt.s32.totalorder %v759_v21, 2 }
 0x19f   :  { %v782_v2 = vsel %vm778_vm6, %v762_v41, %v765_v45  ;;  %v788_v10 = vsel %vm780_vm8, %v771_v54, %v787_v1  ;;  %v790_v52 = vsel %vm778_vm6, %v768_v27, %v771_v54  ;;  %v784_v3 = vsel %vm780_vm8, %v768_v27, %v783_v17  ;;  %v2999_v45 = vpop.f32.mrb[7].mxu1 }
 0x1a0   :  { %v1970_v40 = vadd.s32 4294967294, %v1334_v18  ;;  %v789_v46 = vsel %vm779_vm9, %v786_v12, %v788_v10  ;;  %v791_v5 = vsel %vm781_vm7, %v777_v37, 1326507024  ;;  %v1980_v43 = vadd.s32 4294967169, %v1582_v36 }
 0x1a1   :  { %v792_v58 = vsel %vm780_vm8, %v774_v47, %v791_v5  ;;  %v2978_v60 = vmul.u32.u64.low %v2959_v15, %v789_v46  ;;  %v2979_v16 = vmul.u32.u64.high %v2959_v15, %v789_v46, %v2978_v60  ;;  %vm2984_vm10 = vcmp.le.f32.partialorder %v1266_v23, 0.7853982 }
 0x1a2   :  { %v1322_v26 = vadd.s32 %v2901_v7, %v2912_v0  ;;  %vm1971_vm11 = vcmp.lt.s32.totalorder %v1970_v40, 0  ;;  %v793_v9 = vsel %vm779_vm9, %v790_v52, %v792_v58  ;;  %v1588_v49 = vadd.s32 1, %v1980_v43 }
 0x1a3   :  { %v1337_v29 = vsel %vm1971_vm11, 0, %v1970_v40  ;;  %v2992_v11 = vmul.u32.u64.low %v2959_v15, %v793_v9  ;;  %v2993_v62 = vmul.u32.u64.high %v2959_v15, %v793_v9, %v2992_v11  ;;  %vm526_vm12 = vweird.f32 %v2280_v35 }
 0x1a4   :  { %v1338_v13 = vsub.s32 32, %v1337_v29  ;;  %v1342_v34 = vsub.s32 4294967266, %v1337_v29  ;;  %v1355_v23 = vsel %vm2984_vm10, 0, %v1353_v32  ;;  %v785_v19 = vsel %vm779_vm9, %v782_v2, %v784_v3 }
 0x1a5   :  { %v528_v7 = vand.u32 3, %v527_v4  ;;  %v804_v0 = vadd.s32 1, %v2979_v16  ;;  %v1578_v27 = vand.u32 2147483647, %v2459_v28  ;;  %vm1589_vm14 = vcmp.gt.s32.totalorder %v1588_v49, 0 }
 0x1a6   :  { %v1339_v31 = vshll.u32 %v2954_v22, %v1337_v29  ;;  %v1340_v54 = vshrl.u32 %v1322_v26, %v1338_v13  ;;  %v1343_v47 = vadd.s32 127, %v1342_v34  ;;  %v1590_v39 = vsel %vm1589_vm14, %v1588_v49, 0 }
 0x1a7   :  { %v2132_v50 = vpop.eup %2131  ;;  %v1359_v14 = vadd.s32 3, %v1355_v23  ;;  %v801_v33 = vmul.u32 %v2959_v15, %v785_v19  ;;  %vm803_vm1 = vc.u32 %v2993_v62, %v2978_v60  ;;  %v1592_v21 = vand.u32 31, %v1590_v39 }
 0x1a8   :  { %v2134_v25 = vpop.eup %2133  ;;  %v534_v4 = vxor.u32 2147483648, %v2132_v50  ;;  %v1341_v41 = vor.u32 %v1340_v54, %v1339_v31  ;;  %v1344_v36 = vshll.u32 %v1343_v47, 23  ;;  %v805_v48 = vsel %vm803_vm1, %v804_v0, %v2979_v16 }
 0x1a9   :  { %v531_v8 = vxor.u32 2147483648, %v2134_v25  ;;  %vm533_vm13 = vcmp.eq.s32.totalorder %v528_v7, 2  ;;  %v806_v22 = vadd.s32 %v805_v48, %v801_v33  ;;  %v1593_v37 = vsub.s32 32, %v1592_v21 }
 0x1aa   :  { %vm529_vm0 = vcmp.lt.s32.totalorder %v528_v7, 2  ;;  %vm530_vm2 = vcmp.eq.s32.totalorder %v528_v7, 0  ;;  %v535_v17 = vsel %vm533_vm13, %v534_v4, %v2134_v25  ;;  %v1345_v12 = vor.u32 4788187, %v1344_v36 }
 0x1ab   :  { %v532_v1 = vsel %vm530_vm2, %v2132_v50, %v531_v8  ;;  %v3008_v15 = vand.u32 3, %v1359_v14  ;;  %v807_v18 = vadd.s32 536870912, %v806_v22  ;;  %v1585_v32 = vand.u32 8388607, %v1578_v27 }
 0x1ac   :  { %v536_v2 = vsel %vm529_vm0, %v532_v1, %v535_v17  ;;  %v1346_v10 = vand.u32 2147483647, %v1345_v12  ;;  %v1348_v52 = vcvt.s32.f32 %v1341_v41  ;;  %v1596_v40 = vshrl.u32 %v2172_v57, %v1593_v37 }
 0x1ad   :  { %v537_v3 = vsel %vm526_vm12, nan, %v536_v2  ;;  %v808_v46 = vshrl.u32 %v807_v18, 30  ;;  %v1599_v5 = vshrl.u32 %v2173_v59, %v1593_v37  ;;  %v1602_v58 = vshrl.u32 %v2174_v61, %v1593_v37 }
 0x1ae   :  { %1893 = vst.msk [vmem:[%s3527_s2 + $0x10] sm:$0xff] %vm1890_vm15, %v537_v3  ;;  %v1349_v16 = vmul.f32 %v1348_v52, %v1346_v10  ;;  %v1591_v43 = vshrl.u32 %v1590_v39, 5  ;;  %v1604_v26 = vshll.u32 %v2174_v61, %v1592_v21  ;;  %v1605_v9 = vshrl.u32 %v2175_v63, %v1593_v37 }
 0x1af   :  { %v809_v29 = vshll.u32 %v808_v46, 30  ;;  %v1595_v35 = vshll.u32 %v2171_v53, %v1592_v21  ;;  %v1598_v11 = vshll.u32 %v2172_v57, %v1592_v21  ;;  %v1601_v49 = vshll.u32 %v2173_v59, %v1592_v21 }
 0x1b0   :  { %v1350_v13 = vxor.u32 2147483648, %v1349_v16  ;;  %v1606_v34 = vor.u32 %v1605_v9, %v1604_v26  ;;  %v1607_v23 = vshll.u32 %v2175_v63, %v1592_v21  ;;  %v1608_v19 = vshrl.u32 %v2176_v6, %v1593_v37 }
 0x1b1   :  { %vm748_vm3 = vcmp.lt.s32.totalorder %v2363_v38, 0  ;;  %v3029_v7 = vsub.s32 %v806_v22, %v809_v29  ;;  %v1597_v0 = vor.u32 %v1596_v40, %v1595_v35  ;;  %v1600_v31 = vor.u32 %v1599_v5, %v1598_v11 }
 0x1b2   :  { %v1603_v54 = vor.u32 %v1602_v58, %v1601_v49  ;;  %v1351_v47 = vsel %vm1268_vm5, %v1350_v13, %v1349_v16  ;;  %v1586_v39 = vor.u32 8388608, %v1585_v32  ;;  %v1609_v50 = vor.u32 %v1608_v19, %v1607_v23 }
 0x1b3   :  { %v645_v14 = vand.u32 2139095040, %v2563_v51  ;;  %v1354_v33 = vsel %vm2984_vm10, %v2283_v42, %v1351_v47  ;;  %v812_v21 = vsub.s32 0, %v3029_v7  ;;  %v1594_v25 = vshrl.u32 %v2171_v53, %v1593_v37 }
 0x1b4   :  { %vm1613_vm4 = vcmp.lt.s32.totalorder %v1591_v43, 4  ;;  %2135 = vcosq.f32 %v1354_v33  ;;  %vm3041_vm6 = vcmp.le.f32.partialorder %v746_v20, 0.7853982  ;;  %vm1610_vm5 = vcmp.lt.s32.totalorder %v1591_v43, 1 }
 0x1b5   :  { %vm1612_vm7 = vcmp.lt.s32.totalorder %v1591_v43, 3  ;;  %v1619_v41 = vsel %vm1613_vm4, %v1606_v34, 920167782  ;;  %2137 = vsinq.f32 %v1354_v33  ;;  %v1949_v36 = vmin.u32 %v812_v21, %v3029_v7 }
 0x1b6   :  { %v1615_v30 = vsel %vm1613_vm4, %v1603_v54, 2102212464  ;;  %v1618_v48 = vsel %vm1610_vm5, %v1597_v0, %v1600_v31  ;;  %v832_v8 = vsub.s32 4, %v808_v46  ;;  %v1620_v22 = vsel %vm1612_vm7, %v1603_v54, %v1619_v41 }
 0x1b7   :  { %v1622_v37 = vsel %vm1610_vm5, %v1600_v31, %v1603_v54  ;;  %v1623_v17 = vsel %vm1613_vm4, %v1609_v50, 1326507024  ;;  %v814_v12 = vclz %v1949_v36  ;;  %vm1611_vm8 = vcmp.lt.s32.totalorder %v1591_v43, 2 }
 0x1b8   :  { %v1614_v1 = vsel %vm1610_vm5, %v1594_v25, %v1597_v0  ;;  %v1626_v20 = vshll.u32 %v1586_v39, 8  ;;  %v1616_v18 = vsel %vm1612_vm7, %v1600_v31, %v1615_v30  ;;  %v1621_v32 = vsel %vm1611_vm8, %v1618_v48, %v1620_v22 }
 0x1b9   :  { %v1624_v2 = vsel %vm1612_vm7, %v1606_v34, %v1623_v17  ;;  %v646_v10 = vshrl.u32 %v645_v14, 23  ;;  %v1950_v52 = vadd.s32 4294967294, %v814_v12  ;;  %v833_v58 = vsel %vm748_vm3, %v832_v8, %v808_v46 }
 0x1ba   :  { %v1625_v40 = vsel %vm1611_vm8, %v1622_v37, %v1624_v2  ;;  %v3051_v3 = vmul.u32.u64.low %v1626_v20, %v1621_v32  ;;  %v3052_v5 = vmul.u32.u64.high %v1626_v20, %v1621_v32, %v3051_v3  ;;  %vm1362_vm9 = vcmp.eq.s32.totalorder %v3008_v15, 0 }
 0x1bb   :  { %v3057_v16 = vmul.u32.u64.low %v1626_v20, %v1625_v40  ;;  %v3058_v26 = vmul.u32.u64.high %v1626_v20, %v1625_v40, %v3057_v16  ;;  %v1944_v9 = vadd.s32 4294967169, %v646_v10  ;;  %vm1365_vm10 = vcmp.eq.s32.totalorder %v3008_v15, 2 }
 0x1bc   :  { %vm1951_vm11 = vcmp.lt.s32.totalorder %v1950_v52, 0  ;;  %v1617_v29 = vsel %vm1611_vm8, %v1614_v1, %v1616_v18  ;;  %v802_v35 = vadd.s32 %v2978_v60, %v2993_v62  ;;  %v642_v49 = vand.u32 2147483647, %v2563_v51 }
 0x1bd   :  { %v817_v11 = vsel %vm1951_vm11, 0, %v1950_v52  ;;  %v652_v13 = vadd.s32 1, %v1944_v9  ;;  %v835_v23 = vsel %vm3041_vm6, 0, %v833_v58  ;;  %v1636_v19 = vadd.s32 1, %v3052_v5 }
 0x1be   :  { %v818_v34 = vsub.s32 32, %v817_v11  ;;  %v822_v46 = vsub.s32 4294967266, %v817_v11  ;;  %v2136_v0 = vpop.eup %2135  ;;  %v819_v31 = vshll.u32 %v3029_v7, %v817_v11  ;;  %v1633_v54 = vmul.u32 %v1626_v20, %v1617_v29 }
 0x1bf   :  { %vm1635_vm12 = vc.u32 %v3058_v26, %v3051_v3  ;;  %vm653_vm14 = vcmp.gt.s32.totalorder %v652_v13, 0  ;;  %v2138_v60 = vpop.eup %2137  ;;  %v1366_v62 = vxor.u32 2147483648, %v2136_v0  ;;  %v839_v14 = vadd.s32 3, %v835_v23 }
 0x1c0   :  { %v820_v43 = vshrl.u32 %v802_v35, %v818_v34  ;;  %v823_v47 = vadd.s32 127, %v822_v46  ;;  %v1637_v39 = vsel %vm1635_vm12, %v1636_v19, %v3052_v5  ;;  %v1363_v50 = vxor.u32 2147483648, %v2138_v60 }
 0x1c1   :  { %v1638_v33 = vadd.s32 %v1637_v39, %v1633_v54  ;;  %v654_v21 = vsel %vm653_vm14, %v652_v13, 0  ;;  %v1367_v25 = vsel %vm1365_vm10, %v1366_v62, %v2138_v60  ;;  %v649_v36 = vand.u32 8388607, %v642_v49 }
 0x1c2   :  { %v821_v41 = vor.u32 %v820_v43, %v819_v31  ;;  %v824_v7 = vshll.u32 %v823_v47, 23  ;;  %vm1361_vm1 = vcmp.lt.s32.totalorder %v3008_v15, 2  ;;  %v1364_v30 = vsel %vm1362_vm9, %v2136_v0, %v1363_v50 }
 0x1c3   :  { %v1639_v48 = vadd.s32 536870912, %v1638_v33  ;;  %v656_v8 = vand.u32 31, %v654_v21  ;;  %vm1358_vm13 = vweird.f32 %v2283_v42  ;;  %v1368_v22 = vsel %vm1361_vm1, %v1364_v30, %v1367_v25 }
 0x1c4   :  { %v825_v37 = vor.u32 4788187, %v824_v7  ;;  %v1369_v17 = vsel %vm1358_vm13, nan, %v1368_v22  ;;  %v828_v18 = vcvt.s32.f32 %v821_v41  ;;  %v3087_v32 = vand.u32 3, %v839_v14 }
 0x1c5   :  { %v3081_v12 = vshrl.u32 %v1639_v48, 30  ;;  %v657_v1 = vsub.s32 32, %v656_v8  ;;  %1901 = vst.msk [vmem:[%s3527_s2 + $0x50] sm:$0xff] %vm1890_vm15, %v1369_v17  ;;  %v650_v15 = vor.u32 8388608, %v649_v36  ;;  %v659_v42 = vshll.u32 %v2171_v53, %v656_v8 }
 0x1c6   :  { %v826_v20 = vand.u32 2147483647, %v825_v37  ;;  %v1477_v52 = vand.u32 2139095040, %v2664_v56  ;;  %v655_v29 = vshrl.u32 %v654_v21, 5  ;;  %v662_v35 = vshll.u32 %v2172_v57, %v656_v8 }
 0x1c7   :  { %v1641_v2 = vshll.u32 %v3081_v12, 30  ;;  %v660_v10 = vshrl.u32 %v2172_v57, %v657_v1  ;;  %v663_v5 = vshrl.u32 %v2173_v59, %v657_v1  ;;  %v666_v58 = vshrl.u32 %v2174_v61, %v657_v1 }
 0x1c8   :  { %v829_v40 = vmul.f32 %v828_v18, %v826_v20  ;;  %v669_v16 = vshrl.u32 %v2175_v63, %v657_v1  ;;  %v665_v11 = vshll.u32 %v2173_v59, %v656_v8  ;;  %v668_v46 = vshll.u32 %v2174_v61, %v656_v8 }
 0x1c9   :  { %v3096_v9 = vsub.s32 %v1638_v33, %v1641_v2  ;;  %v661_v34 = vor.u32 %v660_v10, %v659_v42  ;;  %v671_v23 = vshll.u32 %v2175_v63, %v656_v8  ;;  %v664_v0 = vor.u32 %v663_v5, %v662_v35 }
 0x1ca   :  { %v830_v13 = vxor.u32 2147483648, %v829_v40  ;;  %v667_v31 = vor.u32 %v666_v58, %v665_v11  ;;  %v672_v54 = vshrl.u32 %v2176_v6, %v657_v1  ;;  %v1634_v62 = vadd.s32 %v3051_v3, %v3058_v26 }
 0x1cb   :  { %v1644_v19 = vsub.s32 0, %v3096_v9  ;;  %v670_v43 = vor.u32 %v669_v16, %v668_v46  ;;  %v690_v47 = vshll.u32 %v650_v15, 8  ;;  %v1478_v33 = vshrl.u32 %v1477_v52, 23 }
 0x1cc   :  { %v831_v60 = vsel %vm748_vm3, %v830_v13, %v829_v40  ;;  %v673_v14 = vor.u32 %v672_v54, %v671_v23  ;;  %v658_v21 = vshrl.u32 %v2171_v53, %v657_v1  ;;  %vm674_vm0 = vcmp.lt.s32.totalorder %v655_v29, 1 }
 0x1cd   :  { %v834_v39 = vsel %vm3041_vm6, %v2363_v38, %v831_v60  ;;  %v1981_v50 = vmin.u32 %v1644_v19, %v3096_v9  ;;  %vm677_vm2 = vcmp.lt.s32.totalorder %v655_v29, 4  ;;  %vm1580_vm3 = vcmp.lt.s32.totalorder %v2459_v28, 0 }
 0x1ce   :  { %2139 = vcosq.f32 %v834_v39  ;;  %v679_v3 = vsel %vm677_vm2, %v667_v31, 2102212464  ;;  %v682_v26 = vsel %vm674_vm0, %v661_v34, %v664_v0  ;;  %vm675_vm4 = vcmp.lt.s32.totalorder %v655_v29, 2 }
 0x1cf   :  { %2141 = vsinq.f32 %v834_v39  ;;  %v1646_v25 = vclz %v1981_v50  ;;  %vm676_vm5 = vcmp.lt.s32.totalorder %v655_v29, 3  ;;  %v683_v41 = vsel %vm677_vm2, %v670_v43, 920167782 }
 0x1d0   :  { %v686_v4 = vsel %vm674_vm0, %v664_v0, %v667_v31  ;;  %v678_v36 = vsel %vm674_vm0, %v658_v21, %v661_v34  ;;  %v684_v30 = vsel %vm676_vm5, %v667_v31, %v683_v41  ;;  %v687_v48 = vsel %vm677_vm2, %v673_v14, 1326507024 }
 0x1d1   :  { %v1982_v7 = vadd.s32 4294967294, %v1646_v25  ;;  %v680_v8 = vsel %vm676_vm5, %v664_v0, %v679_v3  ;;  %v685_v22 = vsel %vm675_vm4, %v682_v26, %v684_v30  ;;  %v688_v37 = vsel %vm676_vm5, %v670_v43, %v687_v48 }
 0x1d2   :  { %v1976_v17 = vadd.s32 4294967169, %v1478_v33  ;;  %v689_v1 = vsel %vm675_vm4, %v686_v4, %v688_v37  ;;  %v3116_v20 = vmul.u32.u64.low %v690_v47, %v685_v22  ;;  %v3117_v18 = vmul.u32.u64.high %v690_v47, %v685_v22, %v3116_v20 }
 0x1d3   :  { %vm1983_vm6 = vcmp.lt.s32.totalorder %v1982_v7, 0  ;;  %v1664_v2 = vsub.s32 4, %v3081_v12  ;;  %v3121_v42 = vmul.u32.u64.low %v690_v47, %v689_v1  ;;  %v3122_v10 = vmul.u32.u64.high %v690_v47, %v689_v1, %v3121_v42 }
 0x1d4   :  { %v1649_v15 = vsel %vm1983_vm6, 0, %v1982_v7  ;;  %v681_v5 = vsel %vm675_vm4, %v678_v36, %v680_v8  ;;  %v1484_v58 = vadd.s32 1, %v1976_v17  ;;  %vm842_vm7 = vcmp.eq.s32.totalorder %v3087_v32, 0 }
 0x1d5   :  { %v1650_v52 = vsub.s32 32, %v1649_v15  ;;  %v1654_v40 = vsub.s32 4294967266, %v1649_v15  ;;  %vm3128_vm8 = vcmp.le.f32.partialorder %v1578_v27, 0.7853982  ;;  %v1651_v35 = vshll.u32 %v3096_v9, %v1649_v15 }
 0x1d6   :  { %v1474_v11 = vand.u32 2147483647, %v2664_v56  ;;  %v700_v46 = vadd.s32 1, %v3117_v18  ;;  %vm1485_vm9 = vcmp.gt.s32.totalorder %v1484_v58, 0  ;;  %v1665_v23 = vsel %vm1580_vm3, %v1664_v2, %v3081_v12 }
 0x1d7   :  { %v1652_v13 = vshrl.u32 %v1634_v62, %v1650_v52  ;;  %v1655_v34 = vadd.s32 127, %v1654_v40  ;;  %v697_v19 = vmul.u32 %v690_v47, %v681_v5  ;;  %vm699_vm10 = vc.u32 %v3122_v10, %v3116_v20 }
 0x1d8   :  { %v2140_v29 = vpop.eup %2139  ;;  %v1486_v27 = vsel %vm1485_vm9, %v1484_v58, 0  ;;  %v701_v60 = vsel %vm699_vm10, %v700_v46, %v3117_v18  ;;  %vm845_vm11 = vcmp.eq.s32.totalorder %v3087_v32, 2  ;;  %v1667_v12 = vsel %vm3128_vm8, 0, %v1665_v23 }
 0x1d9   :  { %v2142_v0 = vpop.eup %2141  ;;  %v846_v31 = vxor.u32 2147483648, %v2140_v29  ;;  %v1653_v9 = vor.u32 %v1652_v13, %v1651_v35  ;;  %v1656_v54 = vshll.u32 %v1655_v34, 23  ;;  %v702_v43 = vadd.s32 %v701_v60, %v697_v19 }
 0x1da   :  { %v843_v62 = vxor.u32 2147483648, %v2142_v0  ;;  %v1488_v39 = vand.u32 31, %v1486_v27  ;;  %v1481_v47 = vand.u32 8388607, %v1474_v11  ;;  %vm841_vm12 = vcmp.lt.s32.totalorder %v3087_v32, 2 }
 0x1db   :  { %v847_v50 = vsel %vm845_vm11, %v846_v31, %v2142_v0  ;;  %v1657_v14 = vor.u32 4788187, %v1656_v54  ;;  %v703_v21 = vadd.s32 536870912, %v702_v43  ;;  %vm838_vm14 = vweird.f32 %v2363_v38 }
 0x1dc   :  { %v844_v33 = vsel %vm842_vm7, %v2140_v29, %v843_v62  ;;  %v1489_v25 = vsub.s32 32, %v1488_v39  ;;  %v1660_v41 = vcvt.s32.f32 %v1653_v9  ;;  %v1671_v7 = vadd.s32 3, %v1667_v12 }
 0x1dd   :  { %v848_v3 = vsel %vm841_vm12, %v844_v33, %v847_v50  ;;  %v1658_v26 = vand.u32 2147483647, %v1657_v14  ;;  %v704_v36 = vshrl.u32 %v703_v21, 30  ;;  %v1482_v32 = vor.u32 8388608, %v1481_v47 }
 0x1de   :  { %v849_v4 = vsel %vm838_vm14, nan, %v848_v3  ;;  %v1492_v30 = vshrl.u32 %v2172_v57, %v1489_v25  ;;  %v1495_v8 = vshrl.u32 %v2173_v59, %v1489_v25  ;;  %v1498_v22 = vshrl.u32 %v2174_v61, %v1489_v25 }
 0x1df   :  { %1896 = vst.msk [vmem:[%s3527_s2 + $0x28] sm:$0xff] %vm1890_vm15, %v849_v4  ;;  %v1661_v48 = vmul.f32 %v1660_v41, %v1658_v26  ;;  %v705_v38 = vshll.u32 %v704_v36, 30  ;;  %v1491_v37 = vshll.u32 %v2171_v53, %v1488_v39  ;;  %v1494_v17 = vshll.u32 %v2172_v57, %v1488_v39 }
 0x1e0   :  { %v1501_v1 = vshrl.u32 %v2175_v63, %v1489_v25  ;;  %v1487_v15 = vshrl.u32 %v1486_v27, 5  ;;  %v1497_v2 = vshll.u32 %v2173_v59, %v1488_v39  ;;  %v1500_v42 = vshll.u32 %v2174_v61, %v1488_v39 }
 0x1e1   :  { %v1662_v18 = vxor.u32 2147483648, %v1661_v48  ;;  %v3162_v52 = vsub.s32 %v702_v43, %v705_v38  ;;  %v1493_v40 = vor.u32 %v1492_v30, %v1491_v37  ;;  %v1496_v5 = vor.u32 %v1495_v8, %v1494_v17 }
 0x1e2   :  { %v1504_v58 = vshrl.u32 %v2176_v6, %v1489_v25  ;;  %vm644_vm1 = vcmp.lt.s32.totalorder %v2563_v51, 0  ;;  %v1499_v13 = vor.u32 %v1498_v22, %v1497_v2  ;;  %v1502_v34 = vor.u32 %v1501_v1, %v1500_v42 }
 0x1e3   :  { %v1663_v35 = vsel %vm1580_vm3, %v1662_v18, %v1661_v48  ;;  %v1503_v46 = vshll.u32 %v2175_v63, %v1488_v39  ;;  %v3172_v23 = vand.u32 3, %v1671_v7  ;;  %v708_v19 = vsub.s32 0, %v3162_v52 }
 0x1e4   :  { %v1666_v29 = vsel %vm3128_vm8, %v2459_v28, %v1663_v35  ;;  %v954_v27 = vand.u32 2147483647, %v2764_v24  ;;  %v1490_v0 = vshrl.u32 %v2171_v53, %v1489_v25  ;;  %v1522_v9 = vshll.u32 %v1482_v32, 8 }
 0x1e5   :  { %2143 = vcosq.f32 %v1666_v29  ;;  %v1505_v31 = vor.u32 %v1504_v58, %v1503_v46  ;;  %vm3179_vm13 = vcmp.le.f32.partialorder %v642_v49, 0.7853982  ;;  %v1945_v16 = vmin.u32 %v708_v19, %v3162_v52 }
 0x1e6   :  { %2145 = vsinq.f32 %v1666_v29  ;;  %vm1506_vm0 = vcmp.lt.s32.totalorder %v1487_v15, 1  ;;  %vm1509_vm2 = vcmp.lt.s32.totalorder %v1487_v15, 4  ;;  %v728_v60 = vsub.s32 4, %v704_v36 }
 0x1e7   :  { %v1511_v62 = vsel %vm1509_vm2, %v1499_v13, 2102212464  ;;  %v1514_v43 = vsel %vm1506_vm0, %v1493_v40, %v1496_v5  ;;  %v1515_v39 = vsel %vm1509_vm2, %v1502_v34, 920167782  ;;  %v710_v50 = vclz %v1945_v16 }
 0x1e8   :  { %vm1507_vm3 = vcmp.lt.s32.totalorder %v1487_v15, 2  ;;  %vm1508_vm4 = vcmp.lt.s32.totalorder %v1487_v15, 3  ;;  %v1518_v14 = vsel %vm1506_vm0, %v1496_v5, %v1499_v13  ;;  %v1510_v12 = vsel %vm1506_vm0, %v1490_v0, %v1493_v40 }
 0x1e9   :  { %v1516_v47 = vsel %vm1508_vm4, %v1499_v13, %v1515_v39  ;;  %v1519_v33 = vsel %vm1509_vm2, %v1505_v31, 1326507024  ;;  %v957_v49 = vand.u32 2139095040, %v2764_v24  ;;  %v1946_v21 = vadd.s32 4294967294, %v710_v50 }
 0x1ea   :  { %v1512_v25 = vsel %vm1508_vm4, %v1496_v5, %v1511_v62  ;;  %v1517_v3 = vsel %vm1507_vm3, %v1514_v43, %v1516_v47  ;;  %v1520_v26 = vsel %vm1508_vm4, %v1502_v34, %v1519_v33  ;;  %vm1673_vm5 = vcmp.lt.s32.totalorder %v3172_v23, 2 }
 0x1eb   :  { %v1521_v41 = vsel %vm1507_vm3, %v1518_v14, %v1520_v26  ;;  %v3188_v4 = vmul.u32.u64.low %v1522_v9, %v1517_v3  ;;  %v3189_v7 = vmul.u32.u64.high %v1522_v9, %v1517_v3, %v3188_v4  ;;  %v958_v30 = vshrl.u32 %v957_v49, 23 }
 0x1ec   :  { %vm1947_vm6 = vcmp.lt.s32.totalorder %v1946_v21, 0  ;;  %v729_v48 = vsel %vm644_vm1, %v728_v60, %v704_v36  ;;  %v3194_v32 = vmul.u32.u64.low %v1522_v9, %v1521_v41  ;;  %v3195_v8 = vmul.u32.u64.high %v1522_v9, %v1521_v41, %v3194_v32 }
 0x1ed   :  { %vm1674_vm7 = vcmp.eq.s32.totalorder %v3172_v23, 0  ;;  %vm1677_vm8 = vcmp.eq.s32.totalorder %v3172_v23, 2  ;;  %v713_v22 = vsel %vm1947_vm6, 0, %v1946_v21  ;;  %v1956_v38 = vadd.s32 4294967169, %v958_v30 }
 0x1ee   :  { %v698_v37 = vadd.s32 %v3116_v20, %v3122_v10  ;;  %v714_v17 = vsub.s32 32, %v713_v22  ;;  %v718_v1 = vsub.s32 4294967266, %v713_v22  ;;  %v1513_v18 = vsel %vm1507_vm3, %v1510_v12, %v1512_v25 }
 0x1ef   :  { %v2144_v2 = vpop.eup %2143  ;;  %v731_v36 = vsel %vm3179_vm13, 0, %v729_v48  ;;  %v1532_v42 = vadd.s32 1, %v3189_v7  ;;  %v961_v40 = vand.u32 8388607, %v954_v27  ;;  %v964_v5 = vadd.s32 1, %v1956_v38 }
 0x1f0   :  { %v2146_v58 = vpop.eup %2145  ;;  %v1678_v35 = vxor.u32 2147483648, %v2144_v2  ;;  %v715_v13 = vshll.u32 %v3162_v52, %v713_v22  ;;  %v716_v34 = vshrl.u32 %v698_v37, %v714_v17  ;;  %v719_v20 = vadd.s32 127, %v718_v1 }
 0x1f1   :  { %v1675_v10 = vxor.u32 2147483648, %v2146_v58  ;;  %v1529_v46 = vmul.u32 %v1522_v9, %v1513_v18  ;;  %vm1531_vm9 = vc.u32 %v3195_v8, %v3188_v4  ;;  %vm965_vm10 = vcmp.gt.s32.totalorder %v964_v5, 0 }
 0x1f2   :  { %v1679_v15 = vsel %vm1677_vm8, %v1678_v35, %v2146_v58  ;;  %v717_v29 = vor.u32 %v716_v34, %v715_v13  ;;  %v720_v19 = vshll.u32 %v719_v20, 23  ;;  %v1533_v0 = vsel %vm1531_vm9, %v1532_v42, %v3189_v7 }
 0x1f3   :  { %v1676_v31 = vsel %vm1674_vm7, %v2144_v2, %v1675_v10  ;;  %v735_v16 = vadd.s32 3, %v731_v36  ;;  %v1534_v52 = vadd.s32 %v1533_v0, %v1529_v46  ;;  %v966_v60 = vsel %vm965_vm10, %v964_v5, 0 }
 0x1f4   :  { %vm1670_vm11 = vweird.f32 %v2459_v28  ;;  %v1680_v9 = vsel %vm1673_vm5, %v1676_v31, %v1679_v15  ;;  %v721_v62 = vor.u32 4788187, %v720_v19  ;;  %v962_v43 = vor.u32 8388608, %v961_v40 }
 0x1f5   :  { %v1681_v39 = vsel %vm1670_vm11, nan, %v1680_v9  ;;  %v1535_v50 = vadd.s32 536870912, %v1534_v52  ;;  %v968_v14 = vand.u32 31, %v966_v60  ;;  %v724_v47 = vcvt.s32.f32 %v717_v29 }
 0x1f6   :  { %1904 = vst.msk [vmem:[%s3527_s2 + $0x68] sm:$0xff] %vm1890_vm15, %v1681_v39  ;;  %v722_v12 = vand.u32 2147483647, %v721_v62  ;;  %v3222_v33 = vand.u32 3, %v735_v16  ;;  %v3224_v25 = vshrl.u32 %v966_v60, 5  ;;  %v3226_v23 = vshll.u32 %v962_v43, 8 }
 0x1f7   :  { %v1536_v49 = vshrl.u32 %v1535_v50, 30  ;;  %v969_v21 = vsub.s32 32, %v968_v14  ;;  %v1789_v3 = vand.u32 2139095040, %v2820_v44  ;;  %vm1476_vm12 = vcmp.lt.s32.totalorder %v2664_v56, 0 }
 0x1f8   :  { %v725_v28 = vmul.f32 %v724_v47, %v722_v12  ;;  %v971_v41 = vshll.u32 %v2171_v53, %v968_v14  ;;  %v974_v30 = vshll.u32 %v2172_v57, %v968_v14  ;;  %v977_v17 = vshll.u32 %v2173_v59, %v968_v14 }
 0x1f9   :  { %v1537_v26 = vshll.u32 %v1536_v49, 30  ;;  %v972_v7 = vshrl.u32 %v2172_v57, %v969_v21  ;;  %v975_v32 = vshrl.u32 %v2173_v59, %v969_v21  ;;  %v978_v22 = vshrl.u32 %v2174_v61, %v969_v21 }
 0x1fa   :  { %v726_v48 = vxor.u32 2147483648, %v725_v28  ;;  %v981_v38 = vshrl.u32 %v2175_v63, %v969_v21  ;;  %v980_v1 = vshll.u32 %v2174_v61, %v968_v14  ;;  %v984_v18 = vshrl.u32 %v2176_v6, %v969_v21 }
 0x1fb   :  { %v3236_v37 = vsub.s32 %v1534_v52, %v1537_v26  ;;  %v973_v36 = vor.u32 %v972_v7, %v971_v41  ;;  %v976_v42 = vor.u32 %v975_v32, %v974_v30  ;;  %v983_v40 = vshll.u32 %v2175_v63, %v968_v14 }
 0x1fc   :  { %v727_v2 = vsel %vm644_vm1, %v726_v48, %v725_v28  ;;  %v979_v35 = vor.u32 %v978_v22, %v977_v17  ;;  %v982_v13 = vor.u32 %v981_v38, %v980_v1  ;;  %v1560_v34 = vsub.s32 4, %v1536_v49 }
 0x1fd   :  { %v730_v5 = vsel %vm3179_vm13, %v2563_v51, %v727_v2  ;;  %v1540_v58 = vsub.s32 0, %v3236_v37  ;;  %v985_v20 = vor.u32 %v984_v18, %v983_v40  ;;  %v1790_v10 = vshrl.u32 %v1789_v3, 23 }
 0x1fe   :  { %2147 = vcosq.f32 %v730_v5  ;;  %vm3250_vm14 = vcmp.le.f32.partialorder %v1474_v11, 0.7853982  ;;  %vm986_vm1 = vcmp.lt.s32.totalorder %v3224_v25, 1  ;;  %vm989_vm13 = vcmp.lt.s32.totalorder %v3224_v25, 4 }
 0x1ff   :  { %2149 = vsinq.f32 %v730_v5  ;;  %v1977_v15 = vmin.u32 %v1540_v58, %v3236_v37  ;;  %vm987_vm0 = vcmp.lt.s32.totalorder %v3224_v25, 2  ;;  %vm988_vm2 = vcmp.lt.s32.totalorder %v3224_v25, 3 }
 0x200   :  { %v994_v54 = vsel %vm986_vm1, %v973_v36, %v976_v42  ;;  %v995_v29 = vsel %vm989_vm13, %v982_v13, 920167782  ;;  %v970_v0 = vshrl.u32 %v2171_v53, %v969_v21  ;;  %v991_v31 = vsel %vm989_vm13, %v979_v35, 2102212464 }
 0x201   :  { %v1542_v19 = vclz %v1977_v15  ;;  %v998_v11 = vsel %vm986_vm1, %v976_v42, %v979_v35  ;;  %v1561_v16 = vsel %vm1476_vm12, %v1560_v34, %v1536_v49  ;;  %v996_v52 = vsel %vm988_vm2, %v979_v35, %v995_v29 }
 0x202   :  { %v999_v60 = vsel %vm989_vm13, %v985_v20, 1326507024  ;;  %v1988_v9 = vadd.s32 4294967169, %v1790_v10  ;;  %v990_v43 = vsel %vm986_vm1, %v970_v0, %v973_v36  ;;  %v997_v39 = vsel %vm987_vm0, %v994_v54, %v996_v52 }
 0x203   :  { %v1978_v62 = vadd.s32 4294967294, %v1542_v19  ;;  %v1000_v50 = vsel %vm988_vm2, %v982_v13, %v999_v60  ;;  %v992_v14 = vsel %vm988_vm2, %v976_v42, %v991_v31  ;;  %vm738_vm4 = vcmp.eq.s32.totalorder %v3222_v33, 0 }
 0x204   :  { %v1001_v12 = vsel %vm987_vm0, %v998_v11, %v1000_v50  ;;  %v3267_v47 = vmul.u32.u64.low %v3226_v23, %v997_v39  ;;  %v3268_v21 = vmul.u32.u64.high %v3226_v23, %v997_v39, %v3267_v47  ;;  %v1796_v3 = vadd.s32 1, %v1988_v9 }
 0x205   :  { %vm1979_vm3 = vcmp.lt.s32.totalorder %v1978_v62, 0  ;;  %v3272_v49 = vmul.u32.u64.low %v3226_v23, %v1001_v12  ;;  %v3273_v28 = vmul.u32.u64.high %v3226_v23, %v1001_v12, %v3272_v49  ;;  %vm741_vm5 = vcmp.eq.s32.totalorder %v3222_v33, 2 }
 0x206   :  { %v1530_v26 = vadd.s32 %v3188_v4, %v3195_v8  ;;  %v1545_v41 = vsel %vm1979_vm3, 0, %v1978_v62  ;;  %v993_v48 = vsel %vm987_vm0, %v990_v43, %v992_v14  ;;  %vm1797_vm6 = vcmp.gt.s32.totalorder %v1796_v3, 0 }
 0x207   :  { %v1546_v7 = vsub.s32 32, %v1545_v41  ;;  %v1550_v30 = vsub.s32 4294967266, %v1545_v41  ;;  %v1563_v22 = vsel %vm3250_vm14, 0, %v1561_v16  ;;  %v1012_v38 = vadd.s32 1, %v3268_v21 }
 0x208   :  { %v2148_v32 = vpop.eup %2147  ;;  %v1786_v17 = vand.u32 2147483647, %v2820_v44  ;;  %v1798_v1 = vsel %vm1797_vm6, %v1796_v3, 0  ;;  %v1547_v4 = vshll.u32 %v3236_v37, %v1545_v41  ;;  %v1009_v25 = vmul.u32 %v3226_v23, %v993_v48 }
 0x209   :  { %v2150_v18 = vpop.eup %2149  ;;  %v742_v2 = vxor.u32 2147483648, %v2148_v32  ;;  %v1548_v8 = vshrl.u32 %v1530_v26, %v1546_v7  ;;  %v1551_v36 = vadd.s32 127, %v1550_v30  ;;  %vm1011_vm7 = vc.u32 %v3273_v28, %v3267_v47 }
 0x20a   :  { %v739_v42 = vxor.u32 2147483648, %v2150_v18  ;;  %v1800_v40 = vand.u32 31, %v1798_v1  ;;  %v1013_v13 = vsel %vm1011_vm7, %v1012_v38, %v3268_v21  ;;  %vm737_vm8 = vcmp.lt.s32.totalorder %v3222_v33, 2 }
 0x20b   :  { %v743_v5 = vsel %vm741_vm5, %v742_v2, %v2150_v18  ;;  %v1549_v58 = vor.u32 %v1548_v8, %v1547_v4  ;;  %v1552_v35 = vshll.u32 %v1551_v36, 23  ;;  %v1014_v34 = vadd.s32 %v1013_v13, %v1009_v25 }
 0x20c   :  { %v740_v37 = vsel %vm738_vm4, %v2148_v32, %v739_v42  ;;  %v1801_v20 = vsub.s32 32, %v1800_v40  ;;  %vm734_vm9 = vweird.f32 %v2563_v51  ;;  %v1567_v54 = vadd.s32 3, %v1563_v22 }
 0x20d   :  { %v744_v23 = vsel %vm737_vm8, %v740_v37, %v743_v5  ;;  %v1553_v10 = vor.u32 4788187, %v1552_v35  ;;  %v1015_v29 = vadd.s32 536870912, %v1014_v34  ;;  %v1556_v31 = vcvt.s32.f32 %v1549_v58 }
 0x20e   :  { %v745_v15 = vsel %vm734_vm9, nan, %v744_v23  ;;  %v1804_v19 = vshrl.u32 %v2172_v57, %v1801_v20  ;;  %v1793_v33 = vand.u32 8388607, %v1786_v17  ;;  %v1807_v11 = vshrl.u32 %v2173_v59, %v1801_v20 }
 0x20f   :  { %1895 = vst.msk [vmem:[%s3527_s2 + $0x20] sm:$0xff] %vm1890_vm15, %v745_v15  ;;  %v1554_v0 = vand.u32 2147483647, %v1553_v10  ;;  %v1016_v51 = vshrl.u32 %v1015_v29, 30  ;;  %v1803_v16 = vshll.u32 %v2171_v53, %v1800_v40  ;;  %v1810_v52 = vshrl.u32 %v2174_v61, %v1801_v20 }
 0x210   :  { %v1813_v60 = vshrl.u32 %v2175_v63, %v1801_v20  ;;  %v1799_v62 = vshrl.u32 %v1798_v1, 5  ;;  %v1806_v43 = vshll.u32 %v2172_v57, %v1800_v40  ;;  %v1812_v39 = vshll.u32 %v2174_v61, %v1800_v40 }
 0x211   :  { %v1557_v9 = vmul.f32 %v1556_v31, %v1554_v0  ;;  %v1017_v50 = vshll.u32 %v1016_v51, 30  ;;  %v1805_v14 = vor.u32 %v1804_v19, %v1803_v16  ;;  %v1809_v12 = vshll.u32 %v2173_v59, %v1800_v40 }
 0x212   :  { %v1816_v21 = vshrl.u32 %v2176_v6, %v1801_v20  ;;  %v1808_v3 = vor.u32 %v1807_v11, %v1806_v43  ;;  %v1814_v26 = vor.u32 %v1813_v60, %v1812_v39  ;;  %v1815_v41 = vshll.u32 %v2175_v63, %v1800_v40 }
 0x213   :  { %v1558_v49 = vxor.u32 2147483648, %v1557_v9  ;;  %v3312_v7 = vand.u32 3, %v1567_v54  ;;  %v3314_v30 = vsub.s32 %v1014_v34, %v1017_v50  ;;  %v1794_v48 = vor.u32 8388608, %v1793_v33 }
 0x214   :  { %v1811_v32 = vor.u32 %v1810_v52, %v1809_v12  ;;  %v1802_v38 = vshrl.u32 %v2171_v53, %v1801_v20  ;;  %v1817_v1 = vor.u32 %v1816_v21, %v1815_v41  ;;  %vm1818_vm10 = vcmp.lt.s32.totalorder %v1799_v62, 1 }
 0x215   :  { %v1559_v22 = vsel %vm1476_vm12, %v1558_v49, %v1557_v9  ;;  %v1020_v2 = vsub.s32 0, %v3314_v30  ;;  %vm1819_vm11 = vcmp.lt.s32.totalorder %v1799_v62, 2  ;;  %vm1821_vm1 = vcmp.lt.s32.totalorder %v1799_v62, 4 }
 0x216   :  { %v1562_v18 = vsel %vm3250_vm14, %v2664_v56, %v1559_v22  ;;  %vm1820_vm13 = vcmp.lt.s32.totalorder %v1799_v62, 3  ;;  %v1826_v4 = vsel %vm1818_vm10, %v1805_v14, %v1808_v3  ;;  %v1827_v8 = vsel %vm1821_vm1, %v1814_v26, 920167782 }
 0x217   :  { %2151 = vcosq.f32 %v1562_v18  ;;  %v1957_v36 = vmin.u32 %v1020_v2, %v3314_v30  ;;  %v1823_v42 = vsel %vm1821_vm1, %v1811_v32, 2102212464  ;;  %v1828_v25 = vsel %vm1820_vm13, %v1811_v32, %v1827_v8 }
 0x218   :  { %2153 = vsinq.f32 %v1562_v18  ;;  %v1829_v40 = vsel %vm1819_vm11, %v1826_v4, %v1828_v25  ;;  %v1830_v46 = vsel %vm1818_vm10, %v1808_v3, %v1811_v32  ;;  %v1831_v5 = vsel %vm1821_vm1, %v1817_v1, 1326507024 }
 0x219   :  { %v1834_v58 = vshll.u32 %v1794_v48, 8  ;;  %vm956_vm12 = vcmp.lt.s32.totalorder %v2764_v24, 0  ;;  %v1022_v35 = vclz %v1957_v36  ;;  %v1040_v13 = vsub.s32 4, %v1016_v51 }
 0x21a   :  { %v1822_v37 = vsel %vm1818_vm10, %v1802_v38, %v1805_v14  ;;  %v1824_v34 = vsel %vm1820_vm13, %v1808_v3, %v1823_v42  ;;  %v1832_v20 = vsel %vm1820_vm13, %v1814_v26, %v1831_v5  ;;  %vm3338_vm14 = vcmp.le.f32.partialorder %v954_v27, 0.7853982 }
 0x21b   :  { %v3332_v23 = vmul.u32.u64.low %v1834_v58, %v1829_v40  ;;  %v3333_v10 = vmul.u32.u64.high %v1834_v58, %v1829_v40, %v3332_v23  ;;  %v1958_v54 = vadd.s32 4294967294, %v1022_v35  ;;  %v1833_v29 = vsel %vm1819_vm11, %v1830_v46, %v1832_v20 }
 0x21c   :  { %v853_v19 = vand.u32 2139095040, %v2898_v55  ;;  %vm1569_vm0 = vcmp.lt.s32.totalorder %v3312_v7, 2  ;;  %vm1573_vm2 = vcmp.eq.s32.totalorder %v3312_v7, 2  ;;  %vm1566_vm3 = vweird.f32 %v2664_v56 }
 0x21d   :  { %v3346_v0 = vmul.u32.u64.low %v1834_v58, %v1833_v29  ;;  %v3347_v31 = vmul.u32.u64.high %v1834_v58, %v1833_v29, %v3346_v0  ;;  %vm1959_vm4 = vcmp.lt.s32.totalorder %v1958_v54, 0  ;;  %v1041_v27 = vsel %vm956_vm12, %v1040_v13, %v1016_v51 }
 0x21e   :  { %v1825_v33 = vsel %vm1819_vm11, %v1822_v37, %v1824_v34  ;;  %v854_v11 = vshrl.u32 %v853_v19, 23  ;;  %v1025_v16 = vsel %vm1959_vm4, 0, %v1958_v54  ;;  %v1844_v52 = vadd.s32 1, %v3333_v10 }
 0x21f   :  { %v850_v60 = vand.u32 2147483647, %v2898_v55  ;;  %v1685_v9 = vand.u32 2139095040, %v2999_v45  ;;  %v1010_v43 = vadd.s32 %v3267_v47, %v3273_v28  ;;  %v1026_v39 = vsub.s32 32, %v1025_v16 }
 0x220   :  { %v1030_v50 = vsub.s32 4294967266, %v1025_v16  ;;  %v1952_v14 = vadd.s32 4294967169, %v854_v11  ;;  %v1027_v21 = vshll.u32 %v3314_v30, %v1025_v16  ;;  %v1043_v51 = vsel %vm3338_vm14, 0, %v1041_v27 }
 0x221   :  { %v2152_v12 = vpop.eup %2151  ;;  %v1841_v62 = vmul.u32 %v1834_v58, %v1825_v33  ;;  %vm1843_vm5 = vc.u32 %v3347_v31, %v3332_v23  ;;  %v1028_v26 = vshrl.u32 %v1010_v43, %v1026_v39  ;;  %v1686_v22 = vshrl.u32 %v1685_v9, 23 }
 0x222   :  { %v2154_v49 = vpop.eup %2153  ;;  %v1574_v3 = vxor.u32 2147483648, %v2152_v12  ;;  %v1031_v41 = vadd.s32 127, %v1030_v50  ;;  %v1845_v48 = vsel %vm1843_vm5, %v1844_v52, %v3333_v10  ;;  %v860_v32 = vadd.s32 1, %v1952_v14 }
 0x223   :  { %v1571_v47 = vxor.u32 2147483648, %v2154_v49  ;;  %v1846_v28 = vadd.s32 %v1845_v48, %v1841_v62  ;;  %vm1570_vm6 = vcmp.eq.s32.totalorder %v3312_v7, 0  ;;  %v1029_v38 = vor.u32 %v1028_v26, %v1027_v21 }
 0x224   :  { %v1575_v30 = vsel %vm1573_vm2, %v1574_v3, %v2154_v49  ;;  %v1032_v1 = vshll.u32 %v1031_v41, 23  ;;  %v1047_v2 = vadd.s32 3, %v1043_v51  ;;  %vm861_vm7 = vcmp.gt.s32.totalorder %v860_v32, 0 }
 0x225   :  { %v1572_v18 = vsel %vm1570_vm6, %v2152_v12, %v1571_v47  ;;  %v1847_v4 = vadd.s32 536870912, %v1846_v28  ;;  %v857_v42 = vand.u32 8388607, %v850_v60  ;;  %v862_v25 = vsel %vm861_vm7, %v860_v32, 0 }
 0x226   :  { %v1576_v8 = vsel %vm1569_vm0, %v1572_v18, %v1575_v30  ;;  %v1033_v36 = vor.u32 4788187, %v1032_v1  ;;  %v864_v5 = vand.u32 31, %v862_v25  ;;  %v1984_v58 = vadd.s32 4294967169, %v1686_v22 }
 0x227   :  { %v1577_v40 = vsel %vm1566_vm3, nan, %v1576_v8  ;;  %v3373_v46 = vshrl.u32 %v1847_v4, 30  ;;  %v1036_v7 = vcvt.s32.f32 %v1029_v38  ;;  %v3380_v20 = vand.u32 3, %v1047_v2 }
 0x228   :  { %1903 = vst.msk [vmem:[%s3527_s2 + $0x60] sm:$0xff] %vm1890_vm15, %v1577_v40  ;;  %v1034_v35 = vand.u32 2147483647, %v1033_v36  ;;  %v865_v37 = vsub.s32 32, %v864_v5  ;;  %v1682_v56 = vand.u32 2147483647, %v2999_v45  ;;  %v867_v27 = vshll.u32 %v2171_v53, %v864_v5 }
 0x229   :  { %v1849_v13 = vshll.u32 %v3373_v46, 30  ;;  %v858_v54 = vor.u32 8388608, %v857_v42  ;;  %v1692_v19 = vadd.s32 1, %v1984_v58  ;;  %v870_v52 = vshll.u32 %v2172_v57, %v864_v5 }
 0x22a   :  { %v1037_v34 = vmul.f32 %v1036_v7, %v1034_v35  ;;  %v868_v29 = vshrl.u32 %v2172_v57, %v865_v37  ;;  %v871_v33 = vshrl.u32 %v2173_v59, %v865_v37  ;;  %v874_v11 = vshrl.u32 %v2174_v61, %v865_v37 }
 0x22b   :  { %v3383_v10 = vsub.s32 %v1846_v28, %v1849_v13  ;;  %v873_v9 = vshll.u32 %v2173_v59, %v864_v5  ;;  %v877_v43 = vshrl.u32 %v2175_v63, %v865_v37  ;;  %v863_v50 = vshrl.u32 %v862_v25, 5 }
 0x22c   :  { %v1038_v0 = vxor.u32 2147483648, %v1037_v34  ;;  %v869_v14 = vor.u32 %v868_v29, %v867_v27  ;;  %v876_v12 = vshll.u32 %v2174_v61, %v864_v5  ;;  %v872_v62 = vor.u32 %v871_v33, %v870_v52 }
 0x22d   :  { %v1852_v16 = vsub.s32 0, %v3383_v10  ;;  %v875_v49 = vor.u32 %v874_v11, %v873_v9  ;;  %v879_v26 = vshll.u32 %v2175_v63, %v864_v5  ;;  %v880_v41 = vshrl.u32 %v2176_v6, %v865_v37 }
 0x22e   :  { %v1039_v39 = vsel %vm956_vm12, %v1038_v0, %v1037_v34  ;;  %v878_v3 = vor.u32 %v877_v43, %v876_v12  ;;  %v1842_v48 = vadd.s32 %v3332_v23, %v3347_v31  ;;  %v898_v28 = vshll.u32 %v858_v54, 8 }
 0x22f   :  { %v1042_v21 = vsel %vm3338_vm14, %v2764_v24, %v1039_v39  ;;  %v1989_v51 = vmin.u32 %v1852_v16, %v3383_v10  ;;  %v866_v32 = vshrl.u32 %v2171_v53, %v865_v37  ;;  %v881_v15 = vor.u32 %v880_v41, %v879_v26 }
 0x230   :  { %2155 = vcosq.f32 %v1042_v21  ;;  %vm882_vm8 = vcmp.lt.s32.totalorder %v863_v50, 1  ;;  %vm1693_vm9 = vcmp.gt.s32.totalorder %v1692_v19, 0  ;;  %vm884_vm10 = vcmp.lt.s32.totalorder %v863_v50, 3 }
 0x231   :  { %2157 = vsinq.f32 %v1042_v21  ;;  %v1854_v47 = vclz %v1989_v51  ;;  %vm885_vm11 = vcmp.lt.s32.totalorder %v863_v50, 4  ;;  %v890_v30 = vsel %vm882_vm8, %v869_v14, %v872_v62 }
 0x232   :  { %v887_v38 = vsel %vm885_vm11, %v875_v49, 2102212464  ;;  %v891_v1 = vsel %vm885_vm11, %v878_v3, 920167782  ;;  %v894_v18 = vsel %vm882_vm8, %v872_v62, %v875_v49  ;;  %v895_v2 = vsel %vm885_vm11, %v881_v15, 1326507024 }
 0x233   :  { %v1990_v22 = vadd.s32 4294967294, %v1854_v47  ;;  %vm1788_vm1 = vcmp.lt.s32.totalorder %v2820_v44, 0  ;;  %vm883_vm12 = vcmp.lt.s32.totalorder %v863_v50, 2  ;;  %v892_v23 = vsel %vm884_vm10, %v875_v49, %v891_v1 }
 0x234   :  { %v896_v31 = vsel %vm884_vm10, %v878_v3, %v895_v2  ;;  %v886_v8 = vsel %vm882_vm8, %v866_v32, %v869_v14  ;;  %v893_v36 = vsel %vm883_vm12, %v890_v30, %v892_v23  ;;  %vm1046_vm14 = vweird.f32 %v2764_v24 }
 0x235   :  { %vm1991_vm13 = vcmp.lt.s32.totalorder %v1990_v22, 0  ;;  %v897_v42 = vsel %vm883_vm12, %v894_v18, %v896_v31  ;;  %v888_v5 = vsel %vm884_vm10, %v872_v62, %v887_v38  ;;  %v1694_v58 = vsel %vm1693_vm9, %v1692_v19, 0 }
 0x236   :  { %v1857_v4 = vsel %vm1991_vm13, 0, %v1990_v22  ;;  %v3416_v35 = vmul.u32.u64.low %v898_v28, %v897_v42  ;;  %v3417_v7 = vmul.u32.u64.high %v898_v28, %v897_v42, %v3416_v35  ;;  %v1696_v0 = vand.u32 31, %v1694_v58 }
 0x237   :  { %v1858_v25 = vsub.s32 32, %v1857_v4  ;;  %v1862_v40 = vsub.s32 4294967266, %v1857_v4  ;;  %v3419_v13 = vmul.u32.u64.low %v898_v28, %v893_v36  ;;  %v3420_v37 = vmul.u32.u64.high %v898_v28, %v893_v36, %v3419_v13 }
 0x238   :  { %v1859_v34 = vshll.u32 %v3383_v10, %v1857_v4  ;;  %vm1049_vm0 = vcmp.lt.s32.totalorder %v3380_v20, 2  ;;  %vm1050_vm2 = vcmp.eq.s32.totalorder %v3380_v20, 0  ;;  %v1872_v33 = vsub.s32 4, %v3373_v46 }
 0x239   :  { %v1860_v54 = vshrl.u32 %v1842_v48, %v1858_v25  ;;  %v1863_v29 = vadd.s32 127, %v1862_v40  ;;  %v889_v19 = vsel %vm883_vm12, %v886_v8, %v888_v5  ;;  %v1697_v43 = vsub.s32 32, %v1696_v0 }
 0x23a   :  { %v2156_v27 = vpop.eup %2155  ;;  %vm1053_vm3 = vcmp.eq.s32.totalorder %v3380_v20, 2  ;;  %vm907_vm4 = vc.u32 %v3417_v7, %v3419_v13  ;;  %v908_v10 = vadd.s32 1, %v3420_v37  ;;  %v905_v21 = vmul.u32 %v898_v28, %v889_v19 }
 0x23b   :  { %v2158_v11 = vpop.eup %2157  ;;  %v1054_v16 = vxor.u32 2147483648, %v2156_v27  ;;  %v1861_v52 = vor.u32 %v1860_v54, %v1859_v34  ;;  %v1864_v9 = vshll.u32 %v1863_v29, 23  ;;  %v1689_v50 = vand.u32 8388607, %v1682_v56 }
 0x23c   :  { %v1051_v39 = vxor.u32 2147483648, %v2158_v11  ;;  %v1873_v62 = vsel %vm1788_vm1, %v1872_v33, %v3373_v46  ;;  %v909_v49 = vsel %vm907_vm4, %v908_v10, %v3420_v37  ;;  %v1700_v3 = vshrl.u32 %v2172_v57, %v1697_v43 }
 0x23d   :  { %v1055_v14 = vsel %vm1053_vm3, %v1054_v16, %v2158_v11  ;;  %v1865_v12 = vor.u32 4788187, %v1864_v9  ;;  %v1868_v48 = vcvt.s32.f32 %v1861_v52  ;;  %v910_v47 = vadd.s32 %v909_v49, %v905_v21 }
 0x23e   :  { %v1052_v51 = vsel %vm1050_vm2, %v2156_v27, %v1051_v39  ;;  %v1695_v32 = vshrl.u32 %v1694_v58, 5  ;;  %v1699_v15 = vshll.u32 %v2171_v53, %v1696_v0  ;;  %v1703_v22 = vshrl.u32 %v2173_v59, %v1697_v43 }
 0x23f   :  { %v1056_v26 = vsel %vm1049_vm0, %v1052_v51, %v1055_v14  ;;  %v1866_v41 = vand.u32 2147483647, %v1865_v12  ;;  %v911_v30 = vadd.s32 536870912, %v910_v47  ;;  %v1702_v20 = vshll.u32 %v2172_v57, %v1696_v0 }
 0x240   :  { %v1057_v28 = vsel %vm1046_vm14, nan, %v1056_v26  ;;  %v1706_v38 = vshrl.u32 %v2174_v61, %v1697_v43  ;;  %v1701_v1 = vor.u32 %v1700_v3, %v1699_v15  ;;  %v1708_v24 = vshll.u32 %v2174_v61, %v1696_v0 }
 0x241   :  { %1898 = vst.msk [vmem:[%s3527_s2 + $0x38] sm:$0xff] %vm1890_vm15, %v1057_v28  ;;  %v1869_v46 = vmul.f32 %v1868_v48, %v1866_v41  ;;  %v1709_v18 = vshrl.u32 %v2175_v63, %v1697_v43  ;;  %v1712_v2 = vshrl.u32 %v2176_v6, %v1697_v43  ;;  %v3456_v31 = vshrl.u32 %v911_v30, 30 }
 0x242   :  { %v1704_v4 = vor.u32 %v1703_v22, %v1702_v20  ;;  %v1705_v8 = vshll.u32 %v2173_v59, %v1696_v0  ;;  %vm3461_vm5 = vcmp.le.f32.partialorder %v1786_v17, 0.7853982  ;;  %v1711_v42 = vshll.u32 %v2175_v63, %v1696_v0 }
 0x243   :  { %v1870_v23 = vxor.u32 2147483648, %v1869_v46  ;;  %v1710_v57 = vor.u32 %v1709_v18, %v1708_v24  ;;  %v1875_v6 = vsel %vm3461_vm5, 0, %v1873_v62  ;;  %v913_v25 = vshll.u32 %v3456_v31, 30 }
 0x244   :  { %v1707_v40 = vor.u32 %v1706_v38, %v1705_v8  ;;  %v1690_v17 = vor.u32 8388608, %v1689_v50  ;;  %v1713_v5 = vor.u32 %v1712_v2, %v1711_v42  ;;  %vm1714_vm6 = vcmp.lt.s32.totalorder %v1695_v32, 1 }
 0x245   :  { %v1871_v61 = vsel %vm1788_vm1, %v1870_v23, %v1869_v46  ;;  %v914_v58 = vsub.s32 %v910_v47, %v913_v25  ;;  %vm1717_vm7 = vcmp.lt.s32.totalorder %v1695_v32, 4  ;;  %v1722_v63 = vsel %vm1714_vm6, %v1701_v1, %v1704_v4 }
 0x246   :  { %v1874_v59 = vsel %vm3461_vm5, %v2820_v44, %v1871_v61  ;;  %v1879_v35 = vadd.s32 3, %v1875_v6  ;;  %vm1716_vm8 = vcmp.lt.s32.totalorder %v1695_v32, 3  ;;  %v1723_v37 = vsel %vm1717_vm7, %v1710_v57, 920167782 }
 0x247   :  { %2159 = vcosq.f32 %v1874_v59  ;;  %v916_v34 = vsub.s32 0, %v914_v58  ;;  %vm1715_vm9 = vcmp.lt.s32.totalorder %v1695_v32, 2  ;;  %v1724_v54 = vsel %vm1716_vm8, %v1707_v40, %v1723_v37 }
 0x248   :  { %2161 = vsinq.f32 %v1874_v59  ;;  %v1726_v29 = vsel %vm1714_vm6, %v1704_v4, %v1707_v40  ;;  %v1719_v0 = vsel %vm1717_vm7, %v1707_v40, 2102212464  ;;  %v1725_v27 = vsel %vm1715_vm9, %v1722_v63, %v1724_v54 }
 0x249   :  { %v1727_v33 = vsel %vm1717_vm7, %v1713_v5, 1326507024  ;;  %v1730_v19 = vshll.u32 %v1690_v17, 8  ;;  %v1953_v11 = vmin.u32 %v916_v34, %v914_v58  ;;  %v1698_v16 = vshrl.u32 %v2171_v53, %v1697_v43 }
 0x24a   :  { %v1728_v52 = vsel %vm1716_vm8, %v1710_v57, %v1727_v33  ;;  %v1880_v14 = vand.u32 3, %v1879_v35  ;;  %v1720_v50 = vsel %vm1716_vm8, %v1704_v4, %v1719_v0  ;;  %v906_v48 = vadd.s32 %v3419_v13, %v3417_v7 }
 0x24b   :  { %v1729_v9 = vsel %vm1715_vm9, %v1726_v29, %v1728_v52  ;;  %v3481_v39 = vmul.u32.u64.low %v1730_v19, %v1725_v27  ;;  %v3482_v10 = vmul.u32.u64.high %v1730_v19, %v1725_v27, %v3481_v39  ;;  %v918_v12 = vclz %v1953_v11 }
 0x24c   :  { %v1718_v21 = vsel %vm1714_vm6, %v1698_v16, %v1701_v1  ;;  %v3487_v51 = vmul.u32.u64.low %v1730_v19, %v1729_v9  ;;  %v3488_v62 = vmul.u32.u64.high %v1730_v19, %v1729_v9, %v3487_v51  ;;  %vm1881_vm10 = vcmp.lt.s32.totalorder %v1880_v14, 2 }
 0x24d   :  { %v1954_v49 = vadd.s32 4294967294, %v918_v12  ;;  %v1721_v53 = vsel %vm1715_vm9, %v1718_v21, %v1720_v50  ;;  %v1740_v43 = vadd.s32 1, %v3482_v10  ;;  %vm1885_vm11 = vcmp.eq.s32.totalorder %v1880_v14, 2 }
 0x24e   :  { %vm1739_vm13 = vc.u32 %v3488_v62, %v3481_v39  ;;  %v1737_v32 = vmul.u32 %v1730_v19, %v1721_v53  ;;  %vm1882_vm12 = vcmp.eq.s32.totalorder %v1880_v14, 0  ;;  %vm1878_vm14 = vweird.f32 %v2820_v44 }
 0x24f   :  { %vm1955_vm1 = vcmp.lt.s32.totalorder %v1954_v49, 0  ;;  %v1741_v20 = vsel %vm1739_vm13, %v1740_v43, %v3482_v10  ;;  %v936_v25 = vsub.s32 4, %v3456_v31  ;;  %vm852_vm0 = vcmp.lt.s32.totalorder %v2898_v55, 0 }
 0x250   :  { %v921_v47 = vsel %vm1955_vm1, 0, %v1954_v49  ;;  %v1742_v18 = vadd.s32 %v1741_v20, %v1737_v32  ;;  %vm851_vm2 = vcmp.le.f32.partialorder %v850_v60, 0.7853982  ;;  %v1738_v0 = vadd.s32 %v3481_v39, %v3488_v62 }
 0x251   :  { %v2160_v3 = vpop.eup %2159  ;;  %v922_v15 = vsub.s32 32, %v921_v47  ;;  %v926_v22 = vsub.s32 4294967266, %v921_v47  ;;  %v923_v30 = vshll.u32 %v914_v58, %v921_v47  ;;  %v937_v5 = vsel %vm852_vm0, %v936_v25, %v3456_v31 }
 0x252   :  { %v2162_v26 = vpop.eup %2161  ;;  %v1886_v41 = vxor.u32 2147483648, %v2160_v3  ;;  %v1743_v4 = vadd.s32 536870912, %v1742_v18  ;;  %v939_v37 = vsel %vm851_vm2, 0, %v937_v5  ;;  %vm942_vm7 = vweird.f32 %v2898_v55 }
 0x253   :  { %v1883_v28 = vxor.u32 2147483648, %v2162_v26  ;;  %v924_v1 = vshrl.u32 %v906_v48, %v922_v15  ;;  %v927_v24 = vadd.s32 127, %v926_v22  ;;  %v943_v54 = vadd.s32 3, %v939_v37 }
 0x254   :  { %v1887_v46 = vsel %vm1885_vm11, %v1886_v41, %v2162_v26  ;;  %v1744_v36 = vshrl.u32 %v1743_v4, 30  ;;  %vm1684_vm8 = vcmp.lt.s32.totalorder %v2999_v45, 0  ;;  %vm1683_vm9 = vcmp.le.f32.partialorder %v1682_v56, 0.7853982 }
 0x255   :  { %v1884_v38 = vsel %vm1882_vm12, %v2160_v3, %v1883_v28  ;;  %v925_v2 = vor.u32 %v924_v1, %v923_v30  ;;  %v928_v23 = vshll.u32 %v927_v24, 23  ;;  %v944_v60 = vand.u32 3, %v943_v54 }
 0x256   :  { %v1888_v7 = vsel %vm1881_vm10, %v1884_v38, %v1887_v46  ;;  %v1745_v61 = vshll.u32 %v1744_v36, 30  ;;  %v1768_v3 = vsub.s32 4, %v1744_v36  ;;  %vm1774_vm13 = vweird.f32 %v2999_v45 }
 0x257   :  { %v1889_v13 = vsel %vm1878_vm14, nan, %v1888_v7  ;;  %v929_v8 = vor.u32 4788187, %v928_v23  ;;  %v932_v42 = vcvt.s32.f32 %v925_v2  ;;  %vm949_vm4 = vcmp.eq.s32.totalorder %v944_v60, 2 }
 0x258   :  { %1906 = vst.msk [vmem:[%s3527_s2 + $0x78] sm:$0xff] %vm1890_vm15, %v1889_v13  ;;  %v1746_v44 = vsub.s32 %v1742_v18, %v1745_v61  ;;  %vm946_vm5 = vcmp.eq.s32.totalorder %v944_v60, 0  ;;  %vm945_vm6 = vcmp.lt.s32.totalorder %v944_v60, 2  ;;  %v1769_v48 = vsel %vm1684_vm8, %v1768_v3, %v1744_v36 }
 0x259   :  { %v930_v57 = vand.u32 2147483647, %v929_v8 }
 0x25a   :  { %v1748_v59 = vsub.s32 0, %v1746_v44 }
 0x25b   :  { %v933_v6 = vmul.f32 %v932_v42, %v930_v57 }
 0x25c   :  { %v1985_v58 = vmin.u32 %v1748_v59, %v1746_v44 }
 0x25d   :  { %v934_v40 = vxor.u32 2147483648, %v933_v6 }
 0x25e   :  { %v1750_v35 = vclz %v1985_v58 }
 0x25f   :  { %v935_v17 = vsel %vm852_vm0, %v934_v40, %v933_v6 }
 0x260   :  { %v938_v63 = vsel %vm851_vm2, %v2898_v55, %v935_v17  ;;  %v1986_v34 = vadd.s32 4294967294, %v1750_v35  ;;  %v1771_v55 = vsel %vm1683_vm9, 0, %v1769_v48 }
 0x261   :  { %2163 = vcosq.f32 %v938_v63  ;;  %v1775_v28 = vadd.s32 3, %v1771_v55 }
 0x262   :  { %2165 = vsinq.f32 %v938_v63  ;;  %vm1987_vm3 = vcmp.lt.s32.totalorder %v1986_v34, 0 }
 0x263   :  { %v1753_v29 = vsel %vm1987_vm3, 0, %v1986_v34  ;;  %v1776_v15 = vand.u32 3, %v1775_v28 }
 0x264   :  { %v1754_v27 = vsub.s32 32, %v1753_v29  ;;  %v1758_v33 = vsub.s32 4294967266, %v1753_v29  ;;  %v1755_v19 = vshll.u32 %v1746_v44, %v1753_v29 }
 0x265   :  { %vm1781_vm10 = vcmp.eq.s32.totalorder %v1776_v15, 2  ;;  %vm1778_vm11 = vcmp.eq.s32.totalorder %v1776_v15, 0  ;;  %vm1777_vm1 = vcmp.lt.s32.totalorder %v1776_v15, 2 }
 0x266   :  { %v1756_v11 = vshrl.u32 %v1738_v0, %v1754_v27  ;;  %v1759_v31 = vadd.s32 127, %v1758_v33 }
 0x268   :  { %v1757_v52 = vor.u32 %v1756_v11, %v1755_v19  ;;  %v1760_v9 = vshll.u32 %v1759_v31, 23 }
 0x26a   :  { %v1761_v21 = vor.u32 4788187, %v1760_v9  ;;  %v1764_v39 = vcvt.s32.f32 %v1757_v52 }
 0x26b   :  { %v2164_v16 = vpop.eup %2163 }
 0x26c   :  { %v2166_v10 = vpop.eup %2165  ;;  %v950_v14 = vxor.u32 2147483648, %v2164_v16  ;;  %v1762_v49 = vand.u32 2147483647, %v1761_v21 }
 0x26d   :  { %v947_v12 = vxor.u32 2147483648, %v2166_v10 }
 0x26e   :  { %v951_v50 = vsel %vm949_vm4, %v950_v14, %v2166_v10  ;;  %v1765_v43 = vmul.f32 %v1764_v39, %v1762_v49 }
 0x26f   :  { %v948_v51 = vsel %vm946_vm5, %v2164_v16, %v947_v12 }
 0x270   :  { %v952_v62 = vsel %vm945_vm6, %v948_v51, %v951_v50  ;;  %v1766_v26 = vxor.u32 2147483648, %v1765_v43 }
 0x271   :  { %v953_v53 = vsel %vm942_vm7, nan, %v952_v62 }
 0x272   :  { %1897 = vst.msk [vmem:[%s3527_s2 + $0x30] sm:$0xff] %vm1890_vm15, %v953_v53  ;;  %v1767_v41 = vsel %vm1684_vm8, %v1766_v26, %v1765_v43 }
 0x273   :  { %v1770_v47 = vsel %vm1683_vm9, %v2999_v45, %v1767_v41 }
 0x274   :  { %2167 = vcosq.f32 %v1770_v47 }
 0x275   :  { %2169 = vsinq.f32 %v1770_v47 }
 0x27e   :  { %v2168_v22 = vpop.eup %2167 }
 0x27f   :  { %v2170_v32 = vpop.eup %2169  ;;  %v1782_v46 = vxor.u32 2147483648, %v2168_v22 }
 0x280   :  { %v1779_v30 = vxor.u32 2147483648, %v2170_v32 }
 0x281   :  { %v1783_v20 = vsel %vm1781_vm10, %v1782_v46, %v2170_v32 }
 0x282   :  { %v1780_v38 = vsel %vm1778_vm11, %v2168_v22, %v1779_v30 }
 0x283   :  { %v1784_v56 = vsel %vm1777_vm1, %v1780_v38, %v1783_v20 }
 0x284   :  { %v1785_v1 = vsel %vm1774_vm13, nan, %v1784_v56 }
 0x285   :  { %1905 = vst.msk [vmem:[%s3527_s2 + $0x70] sm:$0xff] %vm1890_vm15, %v1785_v1 }

</bundles_post_ra>
